<compile_context>
chip_gen: v5e
topology: v5e:2x2
jax: 0.10.0
libtpu: 0.0.40
codegen_flags: <defaults>
</compile_context>

<pallas_src>
import jax
import jax.numpy as jnp
from jax import lax
from jax.experimental import pallas as pl
from jax.experimental.pallas import tpu as pltpu


def _nonlocal_kernel(xq_ref, xfull_ref, wq_ref, bq_ref, wkv_ref, bkv_ref,
                     wp_ref, bp_ref, o_ref, k_sc, v_sc):
    """One (batch, query-tile) grid step.

    xq_ref   : (1, TQ, C) bf16   query tile of the input
    xfull_ref: (1, N,  C) bf16   full input (for k/v, used only at qi == 0)
    wq_ref   : (C, A)     bf16   query 1x1-conv weight (pre-transposed)
    bq_ref   : (1, A)     f32
    wkv_ref  : (C, 2A)    bf16   fused key|value weight (pre-transposed)
    bkv_ref  : (1, 2A)    f32
    wp_ref   : (A, C)     bf16   projection weight (pre-transposed)
    bp_ref   : (1, C)     f32
    o_ref    : (1, TQ, C) f32
    k_sc/v_sc: (N, A)     bf16   per-batch key/value scratch
    """
    a_sz = k_sc.shape[-1]
    qi = pl.program_id(1)

    # Compute K and V once per batch element (first query tile) into scratch.
    @pl.when(qi == 0)
    def _():
        kv = jnp.dot(xfull_ref[0], wkv_ref[...],
                     preferred_element_type=jnp.float32) + bkv_ref[...]   # (N, 2A)
        k_sc[...] = kv[:, :a_sz].astype(k_sc.dtype)
        v_sc[...] = kv[:, a_sz:].astype(v_sc.dtype)

    xq = xq_ref[0]                                                        # (TQ, C) bf16

    # Query projection (1x1 conv) for this tile.
    q = jnp.dot(xq, wq_ref[...], preferred_element_type=jnp.float32) + bq_ref[...]  # (TQ, A) f32

    # scores[n, m] = Q_n . K_m ; softmax over m (key axis) below.
    scores = lax.dot_general(
        q.astype(k_sc.dtype), k_sc[...],
        dimension_numbers=(((1,), (1,)), ((), ())),
        preferred_element_type=jnp.float32)                               # (TQ, N) f32

    # Online-style softmax, normalization deferred past the value matmul.
    m = jnp.max(scores, axis=-1, keepdims=True)                           # (TQ, 1)
    p = jnp.exp(scores - m)                                               # (TQ, N) f32
    s = jnp.sum(p, axis=-1, keepdims=True)                                # (TQ, 1)

    attn = jnp.dot(p.astype(v_sc.dtype), v_sc[...],
                   preferred_element_type=jnp.float32)                    # (TQ, A)
    attn = attn * pl.reciprocal(s, approx=True)                           # normalize

    # Projection (1x1 conv A -> C) + residual.
    y = jnp.dot(attn.astype(wp_ref.dtype), wp_ref[...],
                preferred_element_type=jnp.float32) + bp_ref[...]         # (TQ, C)
    o_ref[0] = (y + xq.astype(jnp.float32)).astype(o_ref.dtype)


def _pick_tq(n):
    # Query-tile size: 128 when it divides N (keeps the live score tile at
    # TQ x N and the sublane axis aligned); otherwise process N in one tile.
    if n % 128 == 0 and n > 128:
        return 128
    return n


def nonlocal_forward(x_nchw, params):
    """Pallas NonLocal forward. x_nchw: (B, C, H, W). Returns (B, C, H, W)."""
    wq, bq, wk, bk, wv, bv, wp, bp = params
    B, C, H, W = x_nchw.shape
    A = wq.shape[0]
    N = H * W

    # NCHW -> (B, N, C), bf16 for the MXU (accumulation stays f32 in-kernel).
    x = jnp.transpose(x_nchw.reshape(B, C, N), (0, 2, 1)).astype(jnp.bfloat16)

    # Pre-transpose / fuse weights once in the wrapper (no in-kernel .T).
    wq_t = wq.T.astype(jnp.bfloat16)                                   # (C, A)
    w_kv = jnp.concatenate([wk.T, wv.T], axis=1).astype(jnp.bfloat16)  # (C, 2A)
    wp_t = wp.T.astype(jnp.bfloat16)                                   # (A, C)
    bq2 = bq.reshape(1, A).astype(jnp.float32)
    b_kv = jnp.concatenate([bk, bv]).reshape(1, 2 * A).astype(jnp.float32)
    bp2 = bp.reshape(1, C).astype(jnp.float32)

    TQ = _pick_tq(N)
    grid = (B, N // TQ)

    def full(shape):
        return pl.BlockSpec(shape, lambda b, qi: (0,) * len(shape))

    # Advisory cost estimate so XLA schedules the surrounding transposes well.
    flops = 2 * B * (N * C * 3 * A + 2 * N * N * A + N * A * C)
    cost = pl.CostEstimate(
        flops=flops,
        transcendentals=B * N * N,
        bytes_accessed=3 * B * N * C * 2 + B * N * C * 4)

    out = pl.pallas_call(
        _nonlocal_kernel,
        out_shape=jax.ShapeDtypeStruct((B, N, C), jnp.float32),
        grid_spec=pltpu.PrefetchScalarGridSpec(
            num_scalar_prefetch=0,
            grid=grid,
            in_specs=[
                pl.BlockSpec((1, TQ, C), lambda b, qi: (b, qi, 0)),  # x query tile
                pl.BlockSpec((1, N, C), lambda b, qi: (b, 0, 0)),    # x full (k/v)
                full((C, A)), full((1, A)),                          # query w, b
                full((C, 2 * A)), full((1, 2 * A)),                  # fused k|v w, b
                full((A, C)), full((1, C)),                          # project w, b
            ],
            out_specs=pl.BlockSpec((1, TQ, C), lambda b, qi: (b, qi, 0)),
            scratch_shapes=[
                pltpu.VMEM((N, A), jnp.bfloat16),  # K cache (per batch element)
                pltpu.VMEM((N, A), jnp.bfloat16),  # V cache (per batch element)
            ],
        ),
        compiler_params=pltpu.CompilerParams(
            dimension_semantics=("parallel", "arbitrary"),
            vmem_limit_bytes=64 * 1024 * 1024,
        ),
        cost_estimate=cost,
    )(x, x, wq_t, bq2, w_kv, b_kv, wp_t, bp2)

    # (B, N, C) -> NCHW
    return jnp.transpose(out, (0, 2, 1)).reshape(B, C, H, W)


def nonlocal_reference(x_nchw, params):
    """Pure-JAX f32 reference mirroring the PyTorch forward exactly."""
    wq, bq, wk, bk, wv, bv, wp, bp = params
    B, C, H, W = x_nchw.shape
    xf = x_nchw.reshape(B, C, -1)                                        # (B, C, N)
    q = jnp.einsum('ac,bcn->ban', wq, xf) + bq[None, :, None]            # (B, A, N)
    k = jnp.einsum('ac,bcn->ban', wk, xf) + bk[None, :, None]            # (B, A, M)
    v = jnp.einsum('ac,bcn->ban', wv, xf) + bv[None, :, None]            # (B, A, M)
    key = jnp.transpose(k, (0, 2, 1))                                    # (B, M, A)
    assignment = jax.nn.softmax(jnp.einsum('bma,ban->bmn', key, q), axis=1)
    res = jnp.einsum('bam,bmn->ban', v, assignment)                      # (B, A, N)
    proj = jnp.einsum('ca,ban->bcn', wp, res) + bp[None, :, None]        # (B, C, N)
    return proj.reshape(B, C, H, W) + x_nchw


def init_params(key, in_size, attention_size):
    """Deterministic synthetic parameters (1x1 conv weights squeezed to 2-D)."""
    ks = jax.random.split(key, 8)
    s_in = 1.0 / jnp.sqrt(in_size)
    s_att = 1.0 / jnp.sqrt(attention_size)
    wq = jax.random.uniform(ks[0], (attention_size, in_size), jnp.float32, -s_in, s_in)
    bq = jax.random.uniform(ks[1], (attention_size,), jnp.float32, -s_in, s_in)
    wk = jax.random.uniform(ks[2], (attention_size, in_size), jnp.float32, -s_in, s_in)
    bk = jax.random.uniform(ks[3], (attention_size,), jnp.float32, -s_in, s_in)
    wv = jax.random.uniform(ks[4], (attention_size, in_size), jnp.float32, -s_in, s_in)
    bv = jax.random.uniform(ks[5], (attention_size,), jnp.float32, -s_in, s_in)
    wp = jax.random.uniform(ks[6], (in_size, attention_size), jnp.float32, -s_att, s_att)
    bp = jax.random.uniform(ks[7], (in_size,), jnp.float32, -s_att, s_att)
    return (wq, bq, wk, bk, wv, bv, wp, bp)


if __name__ == "__main__":
    # Default NonLocal config: size=None, scale=None (no pooling branch).
    B, C, H, W = 2, 4, 16, 16
    ATT = 32

    root = jax.random.PRNGKey(0)
    kx, kp = jax.random.split(root)
    x = jax.random.normal(kx, (B, C, H, W), jnp.float32)
    params = init_params(kp, C, ATT)

    out = jax.block_until_ready(nonlocal_forward(x, params))
    ref = jax.block_until_ready(nonlocal_reference(x, params))

    assert out.shape == (B, C, H, W)
    max_diff = float(jnp.max(jnp.abs(out - ref)))
    # bf16 MXU inputs + approx reciprocal vs. pure-f32 reference -> 2e-2 tol.
    assert jnp.allclose(out, ref, rtol=2e-2, atol=2e-2), (
        f"max abs diff = {max_diff}")

    print("KERNEL_OK")
</pallas_src>

<mosaic_0001>
module attributes {stable_mosaic.version = 11 : i64} {
  func.func @_nonlocal_kernel(%arg0: i32, %arg1: i32, %arg2: memref<1x128x4xbf16, #tpu.memory_space<vmem>>, %arg3: memref<1x256x4xbf16, #tpu.memory_space<vmem>>, %arg4: memref<4x32xbf16, #tpu.memory_space<vmem>>, %arg5: memref<1x32xf32, #tpu.memory_space<vmem>>, %arg6: memref<4x64xbf16, #tpu.memory_space<vmem>>, %arg7: memref<1x64xf32, #tpu.memory_space<vmem>>, %arg8: memref<32x4xbf16, #tpu.memory_space<vmem>>, %arg9: memref<1x4xf32, #tpu.memory_space<vmem>>, %arg10: memref<1x128x4xf32, #tpu.memory_space<vmem>>, %arg11: memref<256x32xbf16, #tpu.memory_space<vmem>>, %arg12: memref<256x32xbf16, #tpu.memory_space<vmem>>) attributes {dimension_semantics = [#tpu.dimension_semantics<parallel>, #tpu.dimension_semantics<arbitrary>], iteration_bounds = array<i64: 2, 2>, scalar_prefetch = 0 : i64, scratch_operands = 2 : i64, tpu.core_type = #tpu.core_type<tc>, window_params = [{transform_indices = @transform_0, window_bounds = array<i64: 1, 128, 4>}, {transform_indices = @transform_1, window_bounds = array<i64: 1, 256, 4>}, {pipeline_mode = #tpu.pipeline_mode<synchronous>, transform_indices = @transform_2, window_bounds = array<i64: 4, 32>}, {pipeline_mode = #tpu.pipeline_mode<synchronous>, transform_indices = @transform_3, window_bounds = array<i64: 1, 32>}, {pipeline_mode = #tpu.pipeline_mode<synchronous>, transform_indices = @transform_4, window_bounds = array<i64: 4, 64>}, {pipeline_mode = #tpu.pipeline_mode<synchronous>, transform_indices = @transform_5, window_bounds = array<i64: 1, 64>}, {pipeline_mode = #tpu.pipeline_mode<synchronous>, transform_indices = @transform_6, window_bounds = array<i64: 32, 4>}, {pipeline_mode = #tpu.pipeline_mode<synchronous>, transform_indices = @transform_7, window_bounds = array<i64: 1, 4>}, {transform_indices = @transform_8, window_bounds = array<i64: 1, 128, 4>}]} {
    %c0_i32 = arith.constant 0 : i32
    %0 = arith.cmpi eq, %arg1, %c0_i32 : i32
    %1 = arith.extui %0 : i1 to i32
    %c0_i32_0 = arith.constant 0 : i32
    %2 = arith.cmpi ne, %1, %c0_i32_0 : i32
    scf.if %2 {
      %c0_23 = arith.constant 0 : index
      %c0_24 = arith.constant 0 : index
      %c0_25 = arith.constant 0 : index
      %37 = vector.load %arg3[%c0_23, %c0_24, %c0_25] : memref<1x256x4xbf16, #tpu.memory_space<vmem>>, vector<1x256x4xbf16>
      %38 = vector.shape_cast %37 : vector<1x256x4xbf16> to vector<256x4xbf16>
      %c0_26 = arith.constant 0 : index
      %c0_27 = arith.constant 0 : index
      %39 = vector.load %arg6[%c0_26, %c0_27] : memref<4x64xbf16, #tpu.memory_space<vmem>>, vector<4x64xbf16>
      %cst_28 = arith.constant dense<0.000000e+00> : vector<256x64xf32>
      %40 = tpu.matmul %38, %39, %cst_28 {dimension_numbers = #tpu.dot_dimension_numbers<[1], [0], [0], [1], [0, 0, 1, 1], [], []>} : vector<256x4xbf16>, vector<4x64xbf16>, vector<256x64xf32> -> vector<256x64xf32>
      %c0_29 = arith.constant 0 : index
      %c0_30 = arith.constant 0 : index
      %41 = vector.load %arg7[%c0_29, %c0_30] : memref<1x64xf32, #tpu.memory_space<vmem>>, vector<1x64xf32>
      %42 = vector.broadcast %41 : vector<1x64xf32> to vector<256x64xf32>
      %43 = arith.addf %40, %42 : vector<256x64xf32>
      %44 = vector.extract_strided_slice %43 {offsets = [0, 0], sizes = [256, 32], strides = [1, 1]} : vector<256x64xf32> to vector<256x32xf32>
      %45 = arith.truncf %44 : vector<256x32xf32> to vector<256x32xbf16>
      %c0_31 = arith.constant 0 : index
      %c0_32 = arith.constant 0 : index
      %46 = vector.load %arg11[%c0_31, %c0_32] : memref<256x32xbf16, #tpu.memory_space<vmem>>, vector<256x32xbf16>
      tpu.vector_store %arg11[%c0_31, %c0_32], %45 {strides = array<i32>} : memref<256x32xbf16, #tpu.memory_space<vmem>>, vector<256x32xbf16>,
      %47 = vector.extract_strided_slice %43 {offsets = [0, 32], sizes = [256, 32], strides = [1, 1]} : vector<256x64xf32> to vector<256x32xf32>
      %48 = arith.truncf %47 : vector<256x32xf32> to vector<256x32xbf16>
      %c0_33 = arith.constant 0 : index
      %c0_34 = arith.constant 0 : index
      %49 = vector.load %arg12[%c0_33, %c0_34] : memref<256x32xbf16, #tpu.memory_space<vmem>>, vector<256x32xbf16>
      tpu.vector_store %arg12[%c0_33, %c0_34], %48 {strides = array<i32>} : memref<256x32xbf16, #tpu.memory_space<vmem>>, vector<256x32xbf16>,
    } else {
    }
    %c0 = arith.constant 0 : index
    %c0_1 = arith.constant 0 : index
    %c0_2 = arith.constant 0 : index
    %3 = vector.load %arg2[%c0, %c0_1, %c0_2] : memref<1x128x4xbf16, #tpu.memory_space<vmem>>, vector<1x128x4xbf16>
    %4 = vector.shape_cast %3 : vector<1x128x4xbf16> to vector<128x4xbf16>
    %c0_3 = arith.constant 0 : index
    %c0_4 = arith.constant 0 : index
    %5 = vector.load %arg4[%c0_3, %c0_4] : memref<4x32xbf16, #tpu.memory_space<vmem>>, vector<4x32xbf16>
    %cst = arith.constant dense<0.000000e+00> : vector<128x32xf32>
    %6 = tpu.matmul %4, %5, %cst {dimension_numbers = #tpu.dot_dimension_numbers<[1], [0], [0], [1], [0, 0, 1, 1], [], []>} : vector<128x4xbf16>, vector<4x32xbf16>, vector<128x32xf32> -> vector<128x32xf32>
    %c0_5 = arith.constant 0 : index
    %c0_6 = arith.constant 0 : index
    %7 = vector.load %arg5[%c0_5, %c0_6] : memref<1x32xf32, #tpu.memory_space<vmem>>, vector<1x32xf32>
    %8 = vector.broadcast %7 : vector<1x32xf32> to vector<128x32xf32>
    %9 = arith.addf %6, %8 : vector<128x32xf32>
    %10 = arith.truncf %9 : vector<128x32xf32> to vector<128x32xbf16>
    %c0_7 = arith.constant 0 : index
    %c0_8 = arith.constant 0 : index
    %11 = vector.load %arg11[%c0_7, %c0_8] : memref<256x32xbf16, #tpu.memory_space<vmem>>, vector<256x32xbf16>
    %cst_9 = arith.constant dense<0.000000e+00> : vector<128x256xf32>
    %12 = tpu.matmul %10, %11, %cst_9 {dimension_numbers = #tpu.dot_dimension_numbers<[1], [1], [0], [0], [0, 0, 1, 0], [], []>} : vector<128x32xbf16>, vector<256x32xbf16>, vector<128x256xf32> -> vector<128x256xf32>
    %cst_10 = arith.constant dense<0xFF800000> : vector<128xf32>
    %13 = vector.multi_reduction <maximumf>, %12, %cst_10 [1] : vector<128x256xf32> to vector<128xf32>
    %14 = vector.shape_cast %13 : vector<128xf32> to vector<128x1xf32>
    %15 = vector.broadcast %14 : vector<128x1xf32> to vector<128x256xf32>
    %16 = arith.subf %12, %15 : vector<128x256xf32>
    %17 = math.exp %16 : vector<128x256xf32>
    %cst_11 = arith.constant dense<0.000000e+00> : vector<128xf32>
    %18 = vector.multi_reduction <add>, %17, %cst_11 [1] : vector<128x256xf32> to vector<128xf32>
    %19 = vector.shape_cast %18 : vector<128xf32> to vector<128x1xf32>
    %20 = arith.truncf %17 : vector<128x256xf32> to vector<128x256xbf16>
    %c0_12 = arith.constant 0 : index
    %c0_13 = arith.constant 0 : index
    %21 = vector.load %arg12[%c0_12, %c0_13] : memref<256x32xbf16, #tpu.memory_space<vmem>>, vector<256x32xbf16>
    %cst_14 = arith.constant dense<0.000000e+00> : vector<128x32xf32>
    %22 = tpu.matmul %20, %21, %cst_14 {dimension_numbers = #tpu.dot_dimension_numbers<[1], [0], [0], [1], [0, 0, 1, 1], [], []>} : vector<128x256xbf16>, vector<256x32xbf16>, vector<128x32xf32> -> vector<128x32xf32>
    %23 = tpu.reciprocal %19 {approx = true} : vector<128x1xf32> -> vector<128x1xf32>
    %24 = vector.broadcast %23 : vector<128x1xf32> to vector<128x32xf32>
    %25 = arith.mulf %22, %24 : vector<128x32xf32>
    %26 = arith.truncf %25 : vector<128x32xf32> to vector<128x32xbf16>
    %c0_15 = arith.constant 0 : index
    %c0_16 = arith.constant 0 : index
    %27 = vector.load %arg8[%c0_15, %c0_16] : memref<32x4xbf16, #tpu.memory_space<vmem>>, vector<32x4xbf16>
    %cst_17 = arith.constant dense<0.000000e+00> : vector<128x4xf32>
    %28 = tpu.matmul %26, %27, %cst_17 {dimension_numbers = #tpu.dot_dimension_numbers<[1], [0], [0], [1], [0, 0, 1, 1], [], []>} : vector<128x32xbf16>, vector<32x4xbf16>, vector<128x4xf32> -> vector<128x4xf32>
    %c0_18 = arith.constant 0 : index
    %c0_19 = arith.constant 0 : index
    %29 = vector.load %arg9[%c0_18, %c0_19] : memref<1x4xf32, #tpu.memory_space<vmem>>, vector<1x4xf32>
    %30 = vector.broadcast %29 : vector<1x4xf32> to vector<128x4xf32>
    %31 = arith.addf %28, %30 : vector<128x4xf32>
    %32 = arith.extf %4 : vector<128x4xbf16> to vector<128x4xf32>
    %33 = arith.addf %31, %32 : vector<128x4xf32>
    %c0_20 = arith.constant 0 : index
    %c0_21 = arith.constant 0 : index
    %c0_22 = arith.constant 0 : index
    %34 = vector.load %arg10[%c0_20, %c0_21, %c0_22] : memref<1x128x4xf32, #tpu.memory_space<vmem>>, vector<1x128x4xf32>
    %35 = vector.shape_cast %34 : vector<1x128x4xf32> to vector<128x4xf32>
    %36 = vector.shape_cast %33 : vector<128x4xf32> to vector<1x128x4xf32>
    tpu.vector_store %arg10[%c0_20, %c0_21, %c0_22], %36 {strides = array<i32>} : memref<1x128x4xf32, #tpu.memory_space<vmem>>, vector<1x128x4xf32>,
    return
  }
  func.func @transform_0(%arg0: i32, %arg1: i32) -> (i32, i32, i32) {
    %c0_i32 = arith.constant 0 : i32
    %c0_i32_0 = arith.constant 0 : i32
    return %arg0, %arg1, %c0_i32 : i32, i32, i32
  }
  func.func @transform_1(%arg0: i32, %arg1: i32) -> (i32, i32, i32) {
    %c0_i32 = arith.constant 0 : i32
    %c0_i32_0 = arith.constant 0 : i32
    %c0_i32_1 = arith.constant 0 : i32
    return %arg0, %c0_i32, %c0_i32_0 : i32, i32, i32
  }
  func.func @transform_2(%arg0: i32, %arg1: i32) -> (i32, i32) {
    %c0_i32 = arith.constant 0 : i32
    %c0_i32_0 = arith.constant 0 : i32
    %c0_i32_1 = arith.constant 0 : i32
    return %c0_i32, %c0_i32_0 : i32, i32
  }
  func.func @transform_3(%arg0: i32, %arg1: i32) -> (i32, i32) {
    %c0_i32 = arith.constant 0 : i32
    %c0_i32_0 = arith.constant 0 : i32
    %c0_i32_1 = arith.constant 0 : i32
    return %c0_i32, %c0_i32_0 : i32, i32
  }
  func.func @transform_4(%arg0: i32, %arg1: i32) -> (i32, i32) {
    %c0_i32 = arith.constant 0 : i32
    %c0_i32_0 = arith.constant 0 : i32
    %c0_i32_1 = arith.constant 0 : i32
    return %c0_i32, %c0_i32_0 : i32, i32
  }
  func.func @transform_5(%arg0: i32, %arg1: i32) -> (i32, i32) {
    %c0_i32 = arith.constant 0 : i32
    %c0_i32_0 = arith.constant 0 : i32
    %c0_i32_1 = arith.constant 0 : i32
    return %c0_i32, %c0_i32_0 : i32, i32
  }
  func.func @transform_6(%arg0: i32, %arg1: i32) -> (i32, i32) {
    %c0_i32 = arith.constant 0 : i32
    %c0_i32_0 = arith.constant 0 : i32
    %c0_i32_1 = arith.constant 0 : i32
    return %c0_i32, %c0_i32_0 : i32, i32
  }
  func.func @transform_7(%arg0: i32, %arg1: i32) -> (i32, i32) {
    %c0_i32 = arith.constant 0 : i32
    %c0_i32_0 = arith.constant 0 : i32
    %c0_i32_1 = arith.constant 0 : i32
    return %c0_i32, %c0_i32_0 : i32, i32
  }
  func.func @transform_8(%arg0: i32, %arg1: i32) -> (i32, i32, i32) {
    %c0_i32 = arith.constant 0 : i32
    %c0_i32_0 = arith.constant 0 : i32
    return %arg0, %arg1, %c0_i32 : i32, i32, i32
  }
}

</mosaic_0001>

<bundles_post_ra>
// kernel: tpu_custom_call.1
= control target key start
LH: loop header
LB: loop body
LE: loop exit
PB: predicated region body
PF: predicated region fallthrough
CT: control target
= control target key end

     0   :  { %s2605_s27 = smov 0   ;;  %s2607_s28 = smov 0   ;;  %s3130_s0 = inlined_call_operand.vmem [shape: bf16[2,256,4], index: 0, kind: input, shape index: {}]   ;;  %s3131_s1 = inlined_call_operand.vmem [shape: bf16[2,256,4], index: 1, kind: input, shape index: {}]   ;;  %s3132_s2 = inlined_call_operand.vmem [shape: bf16[4,32], index: 2, kind: input, shape index: {}]   ;;  %s3133_s3 = inlined_call_operand.vmem [shape: f32[1,32], index: 3, kind: input, shape index: {}]   ;;  %s3134_s4 = inlined_call_operand.vmem [shape: bf16[4,64], index: 4, kind: input, shape index: {}]   ;;  %s3135_s5 = inlined_call_operand.vmem [shape: f32[1,64], index: 5, kind: input, shape index: {}]   ;;  %s3136_s6 = inlined_call_operand.vmem [shape: bf16[32,4], index: 6, kind: input, shape index: {}]   ;;  %s3137_s7 = inlined_call_operand.vmem [shape: f32[1,4], index: 7, kind: input, shape index: {}]   ;;  %s3138_s8 = inlined_call_operand.vmem [shape: f32[2,256,4], index: 8, kind: output, shape index: {}]  }
   0x1   :  { %s2609_s29 = smov 0   ;;  %s2611_s30 = smov 0  }
   0x2   :  { %s2613_s9 = smov 0  }
   0x3 LB: > { %s27_s10 = sadd.s32 1, %s2549_s29  ;;  %s30_s11 = sadd.s32 1, %s2553_s30  ;;  %s2557_s9 = sphi %s2613_s9, %s18_s9   ;;  %s2553_s30 = sphi %s2611_s30, %s3142_s30   ;;  %s2549_s29 = sphi %s2609_s29, %s3141_s29   ;;  %s2545_s28 = sphi %s2607_s28, %s3140_s28   ;;  %s2541_s27 = sphi %s2605_s27, %s3139_s27  }
   0x4   : > { %p28_p0 = scmp.ge.s32.totalorder %s27_s10, 2  ;;  %p2005_p1 = scmp.ge.s32.totalorder %s2557_s9, 1 }
   0x5   : > { %p293_p2 = scmp.lt.s32.totalorder %s2557_s9, 5 }
   0x6   : > { %s3144_s10 = smov (%p28_p0, %s27_s10), 0  ;;  %s3146_s11 = smov (!%p28_p0, %s30_s11), %s2553_s30 }
   0x7   : > { %p294_p3 = pnand %p2005_p1, %p293_p2  ;;  %p32_p4 = scmp.ge.s32.totalorder %s3146_s11, 2 }
   0x8   : > { %s2006_s12 = sshll.u32 (!%p294_p3), %s2541_s27, 4  ;;  %p341_p5 = scmp.lt.s32.totalorder (!%p294_p3), %s2545_s28, 1 }
   0x9   : > { %s3148_s11 = smov (%p32_p4, %s3146_s11), 0  ;;  %297 = sbr.rel (%p294_p3) target bundleno = 1205 (0x4b5), region = 52 }
   0xa   : > { %p343_p6 = scmp.lt.s32.totalorder (!%p294_p3), %s2006_s12, 31  ;;  %p2014_p7 = scmp.ne.s32.totalorder (!%p294_p3), %s2541_s27, 0 }
   0xe   : > { %s3150_s28 = smov (!%p341_p5, %s2545_s28), 1  ;;  %s3152_s12 = smov (!%p343_p6, %s2006_s12), 31 }
   0xf   : > { %s2007_s13 = sshll.u32 %s3150_s28, 5  ;;  %s2297_s14 = sshll.u32 %s3150_s28, 7 }
  0x10   : > { %s346_s15 = sadd.s32 %s2007_s13, %s3152_s12  ;;  %s2641_s18 = scalar_lea.vmem %s3131_s1, %s2297_s14 }
  0x11   : > { %s2008_s19 = sshll.u32 %s346_s15, 2  ;;  %s2013_s20 = sshll.u32 %s346_s15, 3 }
  0x12   : > { %s2646_s23 = scalar_lea.vmem %s3130_s0, %s2008_s19  ;;  %s2651_s26 = scalar_lea.vmem %s3138_s8, %s2013_s20 }
  0x13   : > { %369 = sbr.rel (%p2014_p7) target bundleno = 362 (0x16a), region = 56  ;;  %s2559_s14 = smov (!%p2014_p7), 96  }
  0x18   : > { %v402_v0 = vld [vmem:[%s3134_s4] sm:$0x3]  ;;  %vm536_vm0 = vcmask 1041408   ;;  %vm487_vm1 = vcmask 31744   ;;  %v2299_v6 = vld [vmem:[%s2641_s18 + $0x8] sm:$0xff]  ;;  %v2300_v10 = vld [vmem:[%s2641_s18 + $0x10] sm:$0xff] }
  0x19   : > { %v538_v1 = vsel %vm536_vm0, %v402_v0, 0  ;;  %v2298_v2 = vld [vmem:[%s2641_s18] sm:$0xff]  ;;  %v2307_v7 = vld [vmem:[%s2641_s18 + $0x48] sm:$0xff]  ;;  %v2308_v11 = vld [vmem:[%s2641_s18 + $0x50] sm:$0xff]  ;;  %vm661_vm2 = vcmask 257024  }
  0x1a   : > { %v2306_v3 = vld [vmem:[%s2641_s18 + $0x40] sm:$0xff]  ;;  %547 = vmatpush.bf16.msra.mxu0 %v538_v1  ;;  %2357 = vmatpush.bf16.msra.mxu2 %v538_v1  ;;  %v2311_v8 = vld [vmem:[%s2641_s18 + $0x68] sm:$0xff]  ;;  %v2312_v12 = vld [vmem:[%s2641_s18 + $0x70] sm:$0xff] }
  0x1b   : > { %v2310_v4 = vld [vmem:[%s2641_s18 + $0x60] sm:$0xff]  ;;  %2358 = vmatpush.bf16.msra.mxu3 %v538_v1  ;;  %2356 = vmatpush.bf16.msra.mxu1 %v538_v1  ;;  %v2303_v9 = vld [vmem:[%s2641_s18 + $0x28] sm:$0xff]  ;;  %v2304_v13 = vld [vmem:[%s2641_s18 + $0x30] sm:$0xff] }
  0x1c   : > { %v2302_v5 = vld [vmem:[%s2641_s18 + $0x20] sm:$0xff]  ;;  %v2309_v14 = vld [vmem:[%s2641_s18 + $0x58] sm:$0xff] }
  0x1d   : > { %2079 = vmatmul.msk.bf16.vlgmr.msra.gmra.mxu0 %vm487_vm1, %v2298_v2  ;;  %2087 = vmatmul.msk.bf16.vlgmr.msra.gmra.mxu2 %vm487_vm1, %v2306_v3  ;;  %v2301_v15 = vld [vmem:[%s2641_s18 + $0x18] sm:$0xff]  ;;  %v2692_v18 = vld [vmem:[%s3135_s5] ss:$0 sm:$0xff] }
  0x1e   : > { %2091 = vmatmul.msk.bf16.vlgmr.msra.gmra.mxu3 %vm487_vm1, %v2310_v4  ;;  %2083 = vmatmul.msk.bf16.vlgmr.msra.gmra.mxu1 %vm487_vm1, %v2302_v5  ;;  %v2305_v16 = vld [vmem:[%s2641_s18 + $0x38] sm:$0xff] }
  0x1f   : > { %v2313_v17 = vld [vmem:[%s2641_s18 + $0x78] sm:$0xff] }
  0x2d   : > { %2080 = vmatmul.msk.bf16.gmra.mxu0 %vm487_vm1, %v2299_v6  ;;  %2088 = vmatmul.msk.bf16.gmra.mxu2 %vm487_vm1, %v2307_v7 }
  0x2e   : > { %2092 = vmatmul.msk.bf16.gmra.mxu3 %vm487_vm1, %v2311_v8  ;;  %2084 = vmatmul.msk.bf16.gmra.mxu1 %vm487_vm1, %v2303_v9 }
  0x3d   : > { %2081 = vmatmul.msk.bf16.gmra.mxu0 %vm487_vm1, %v2300_v10  ;;  %2089 = vmatmul.msk.bf16.gmra.mxu2 %vm487_vm1, %v2308_v11 }
  0x3e   : > { %2093 = vmatmul.msk.bf16.gmra.mxu3 %vm487_vm1, %v2312_v12  ;;  %2085 = vmatmul.msk.bf16.gmra.mxu1 %vm487_vm1, %v2304_v13 }
  0x4d   : > { %2090 = vmatmul.msk.bf16.gmra.mxu2 %vm487_vm1, %v2309_v14  ;;  %2082 = vmatmul.msk.bf16.gmra.mxu0 %vm487_vm1, %v2301_v15 }
  0x4e   : > { %2086 = vmatmul.msk.bf16.gmra.mxu1 %vm487_vm1, %v2305_v16  ;;  %2094 = vmatmul.msk.bf16.gmra.mxu3 %vm487_vm1, %v2313_v17 }
  0x9a   : > { %v549_v19 = vpop.f32.mrf.mxu0 }
  0x9b   : > { %v550_v20 = vadd.f32 %v2692_v18, %v549_v19  ;;  %v569_v21 = vpop.f32.mrf.mxu1 }
  0x9c   : > { %v570_v22 = vadd.f32 %v2692_v18, %v569_v21 }
  0x9d   : > { %v629_v23 = vpack.c.bf16 %v550_v20, %v550_v20 }
  0x9e   : > { %v637_v24 = vpack.c.bf16 %v570_v22, %v570_v22 }
  0x9f   : > { %662 = vst.msk [vmem:[#allocation2] sm:$0xf] %vm661_vm2, %v629_v23  ;;  %726 = vrot.lane.b32.xlu0 %v629_v23, %s2559_s14 }
  0xa0   : > { %670 = vst.msk [vmem:[#allocation2 + $0x20] sm:$0xf] %vm661_vm2, %v637_v24  ;;  %v589_v25 = vpop.f32.mrf.mxu2  ;;  %742 = vrot.lane.b32.xlu2 %v637_v24, %s2559_s14 }
  0xa1   : > { %v590_v26 = vadd.f32 %v2692_v18, %v589_v25  ;;  %v609_v27 = vpop.f32.mrf.mxu3 }
  0xa2   : > { %v610_v28 = vadd.f32 %v2692_v18, %v609_v27  ;;  %v551_v29 = vpop.f32.mrf.mxu0 }
  0xa3   : > { %v645_v30 = vpack.c.bf16 %v590_v26, %v590_v26  ;;  %v552_v31 = vadd.f32 %v2692_v18, %v551_v29  ;;  %v571_v32 = vpop.f32.mrf.mxu1 }
  0xa4   : > { %v653_v33 = vpack.c.bf16 %v610_v28, %v610_v28  ;;  %v572_v34 = vadd.f32 %v2692_v18, %v571_v32 }
  0xa5   : > { %678 = vst.msk [vmem:[#allocation2 + $0x40] sm:$0xf] %vm661_vm2, %v645_v30  ;;  %v630_v35 = vpack.c.bf16 %v552_v31, %v552_v31  ;;  %758 = vrot.lane.b32.xlu1 %v645_v30, %s2559_s14 }
  0xa6   : > { %686 = vst.msk [vmem:[#allocation2 + $0x60] sm:$0xf] %vm661_vm2, %v653_v33  ;;  %v638_v36 = vpack.c.bf16 %v572_v34, %v572_v34 }
  0xa7   : > { %663 = vst.msk [vmem:[#allocation2 + $0x4] sm:$0xf] %vm661_vm2, %v630_v35  ;;  %774 = vrot.lane.b32.xlu0 %v653_v33, %s2559_s14 }
  0xa8   : > { %671 = vst.msk [vmem:[#allocation2 + $0x24] sm:$0xf] %vm661_vm2, %v638_v36  ;;  %v591_v37 = vpop.f32.mrf.mxu2 }
  0xa9   : > { %v592_v38 = vadd.f32 %v2692_v18, %v591_v37  ;;  %v611_v39 = vpop.f32.mrf.mxu3 }
  0xaa   : > { %v612_v40 = vadd.f32 %v2692_v18, %v611_v39  ;;  %v554_v41 = vpop.f32.mrf.mxu0 }
  0xab   : > { %v646_v42 = vpack.c.bf16 %v592_v38, %v592_v38  ;;  %v555_v43 = vadd.f32 %v2692_v18, %v554_v41  ;;  %v574_v44 = vpop.f32.mrf.mxu1 }
  0xac   : > { %v654_v45 = vpack.c.bf16 %v612_v40, %v612_v40  ;;  %v575_v46 = vadd.f32 %v2692_v18, %v574_v44 }
  0xad   : > { %679 = vst.msk [vmem:[#allocation2 + $0x44] sm:$0xf] %vm661_vm2, %v646_v42  ;;  %v631_v47 = vpack.c.bf16 %v555_v43, %v555_v43  ;;  %760 = vrot.lane.b32.xlu2 %v646_v42, %s2559_s14 }
  0xae   : > { %687 = vst.msk [vmem:[#allocation2 + $0x64] sm:$0xf] %vm661_vm2, %v654_v45  ;;  %776 = vrot.lane.b32.xlu1 %v654_v45, %s2559_s14  ;;  %v639_v48 = vpack.c.bf16 %v575_v46, %v575_v46 }
  0xaf   : > { %664 = vst.msk [vmem:[#allocation2 + $0x8] sm:$0xf] %vm661_vm2, %v631_v47  ;;  %728 = vrot.lane.b32.xlu0 %v630_v35, %s2559_s14 }
  0xb0   : > { %672 = vst.msk [vmem:[#allocation2 + $0x28] sm:$0xf] %vm661_vm2, %v639_v48  ;;  %v594_v49 = vpop.f32.mrf.mxu2 }
  0xb1   : > { %v614_v50 = vpop.f32.mrf.mxu3  ;;  %v595_v51 = vadd.f32 %v2692_v18, %v594_v49 }
  0xb2   : > { %v615_v52 = vadd.f32 %v2692_v18, %v614_v50  ;;  %v556_v53 = vpop.f32.mrf.mxu0 }
  0xb3   : > { %v557_v54 = vadd.f32 %v2692_v18, %v556_v53  ;;  %v576_v55 = vpop.f32.mrf.mxu1  ;;  %v647_v56 = vpack.c.bf16 %v595_v51, %v595_v51 }
  0xb4   : > { %v655_v57 = vpack.c.bf16 %v615_v52, %v615_v52  ;;  %v577_v58 = vadd.f32 %v2692_v18, %v576_v55 }
  0xb5   : > { %v632_v59 = vpack.c.bf16 %v557_v54, %v557_v54  ;;  %680 = vst.msk [vmem:[#allocation2 + $0x48] sm:$0xf] %vm661_vm2, %v647_v56 }
  0xb6   : > { %688 = vst.msk [vmem:[#allocation2 + $0x68] sm:$0xf] %vm661_vm2, %v655_v57  ;;  %778 = vrot.lane.b32.xlu2 %v655_v57, %s2559_s14  ;;  %730 = vrot.lane.b32.xlu1 %v631_v47, %s2559_s14  ;;  %v640_v60 = vpack.c.bf16 %v577_v58, %v577_v58 }
  0xb7   : > { %665 = vst.msk [vmem:[#allocation2 + $0xc] sm:$0xf] %vm661_vm2, %v632_v59  ;;  %744 = vrot.lane.b32.xlu0 %v638_v36, %s2559_s14 }
  0xb8   : > { %673 = vst.msk [vmem:[#allocation2 + $0x2c] sm:$0xf] %vm661_vm2, %v640_v60  ;;  %v596_v61 = vpop.f32.mrf.mxu2 }
  0xb9   : > { %v597_v62 = vadd.f32 %v2692_v18, %v596_v61  ;;  %v616_v63 = vpop.f32.mrf.mxu3 }
  0xba   : > { %v559_v0 = vpop.f32.mrf.mxu0  ;;  %v617_v1 = vadd.f32 %v2692_v18, %v616_v63 }
  0xbb   : > { %v560_v2 = vadd.f32 %v2692_v18, %v559_v0  ;;  %v648_v3 = vpack.c.bf16 %v597_v62, %v597_v62  ;;  %v579_v4 = vpop.f32.mrf.mxu1 }
  0xbc   : > { %v656_v5 = vpack.c.bf16 %v617_v1, %v617_v1  ;;  %v580_v6 = vadd.f32 %v2692_v18, %v579_v4 }
  0xbd   : > { %v633_v7 = vpack.c.bf16 %v560_v2, %v560_v2  ;;  %681 = vst.msk [vmem:[#allocation2 + $0x4c] sm:$0xf] %vm661_vm2, %v648_v3 }
  0xbe   : > { %748 = vrot.lane.b32.xlu2 %v640_v60, %s2559_s14  ;;  %746 = vrot.lane.b32.xlu1 %v639_v48, %s2559_s14  ;;  %689 = vst.msk [vmem:[#allocation2 + $0x6c] sm:$0xf] %vm661_vm2, %v656_v5  ;;  %v641_v8 = vpack.c.bf16 %v580_v6, %v580_v6 }
  0xbf   : > { %762 = vrot.lane.b32.xlu0 %v647_v56, %s2559_s14  ;;  %666 = vst.msk [vmem:[#allocation2 + $0x10] sm:$0xf] %vm661_vm2, %v633_v7 }
  0xc0   : > { %674 = vst.msk [vmem:[#allocation2 + $0x30] sm:$0xf] %vm661_vm2, %v641_v8  ;;  %v599_v9 = vpop.f32.mrf.mxu2 }
  0xc1   : > { %v600_v10 = vadd.f32 %v2692_v18, %v599_v9  ;;  %v619_v11 = vpop.f32.mrf.mxu3 }
  0xc2   : > { %v620_v12 = vadd.f32 %v2692_v18, %v619_v11  ;;  %v561_v13 = vpop.f32.mrf.mxu0 }
  0xc3   : > { %v649_v14 = vpack.c.bf16 %v600_v10, %v600_v10  ;;  %v562_v15 = vadd.f32 %v2692_v18, %v561_v13  ;;  %v581_v16 = vpop.f32.mrf.mxu1 }
  0xc4   : > { %v657_v17 = vpack.c.bf16 %v620_v12, %v620_v12  ;;  %v582_v19 = vadd.f32 %v2692_v18, %v581_v16 }
  0xc5   : > { %682 = vst.msk [vmem:[#allocation2 + $0x50] sm:$0xf] %vm661_vm2, %v649_v14  ;;  %v634_v20 = vpack.c.bf16 %v562_v15, %v562_v15 }
  0xc6   : > { %734 = vrot.lane.b32.xlu2 %v633_v7, %s2559_s14  ;;  %732 = vrot.lane.b32.xlu1 %v632_v59, %s2559_s14  ;;  %690 = vst.msk [vmem:[#allocation2 + $0x70] sm:$0xf] %vm661_vm2, %v657_v17  ;;  %v642_v21 = vpack.c.bf16 %v582_v19, %v582_v19 }
  0xc7   : > { %780 = vrot.lane.b32.xlu0 %v656_v5, %s2559_s14  ;;  %667 = vst.msk [vmem:[#allocation2 + $0x14] sm:$0xf] %vm661_vm2, %v634_v20 }
  0xc8   : > { %675 = vst.msk [vmem:[#allocation2 + $0x34] sm:$0xf] %vm661_vm2, %v642_v21  ;;  %v601_v22 = vpop.f32.mrf.mxu2 }
  0xc9   : > { %v602_v23 = vadd.f32 %v2692_v18, %v601_v22  ;;  %v621_v24 = vpop.f32.mrf.mxu3 }
  0xca   : > { %v622_v25 = vadd.f32 %v2692_v18, %v621_v24  ;;  %v564_v26 = vpop.f32.mrf.mxu0 }
  0xcb   : > { %v650_v27 = vpack.c.bf16 %v602_v23, %v602_v23  ;;  %v565_v28 = vadd.f32 %v2692_v18, %v564_v26  ;;  %v584_v29 = vpop.f32.mrf.mxu1 }
  0xcc   : > { %v658_v30 = vpack.c.bf16 %v622_v25, %v622_v25  ;;  %v585_v31 = vadd.f32 %v2692_v18, %v584_v29 }
  0xcd   : > { %683 = vst.msk [vmem:[#allocation2 + $0x54] sm:$0xf] %vm661_vm2, %v650_v27  ;;  %v635_v32 = vpack.c.bf16 %v565_v28, %v565_v28 }
  0xce   : > { %766 = vrot.lane.b32.xlu2 %v649_v14, %s2559_s14  ;;  %764 = vrot.lane.b32.xlu1 %v648_v3, %s2559_s14  ;;  %691 = vst.msk [vmem:[#allocation2 + $0x74] sm:$0xf] %vm661_vm2, %v658_v30  ;;  %v643_v33 = vpack.c.bf16 %v585_v31, %v585_v31 }
  0xcf   : > { %750 = vrot.lane.b32.xlu0 %v641_v8, %s2559_s14  ;;  %668 = vst.msk [vmem:[#allocation2 + $0x18] sm:$0xf] %vm661_vm2, %v635_v32 }
  0xd0   : > { %676 = vst.msk [vmem:[#allocation2 + $0x38] sm:$0xf] %vm661_vm2, %v643_v33  ;;  %v604_v34 = vpop.f32.mrf.mxu2 }
  0xd1   : > { %v605_v35 = vadd.f32 %v2692_v18, %v604_v34  ;;  %v624_v36 = vpop.f32.mrf.mxu3 }
  0xd2   : > { %v566_v37 = vpop.f32.mrf.mxu0  ;;  %v625_v38 = vadd.f32 %v2692_v18, %v624_v36 }
  0xd3   : > { %v651_v39 = vpack.c.bf16 %v605_v35, %v605_v35  ;;  %v567_v40 = vadd.f32 %v2692_v18, %v566_v37  ;;  %v586_v41 = vpop.f32.mrf.mxu1 }
  0xd4   : > { %v587_v42 = vadd.f32 %v2692_v18, %v586_v41  ;;  %v659_v43 = vpack.c.bf16 %v625_v38, %v625_v38 }
  0xd5   : > { %684 = vst.msk [vmem:[#allocation2 + $0x58] sm:$0xf] %vm661_vm2, %v651_v39  ;;  %v636_v44 = vpack.c.bf16 %v567_v40, %v567_v40 }
  0xd6   : > { %736 = vrot.lane.b32.xlu2 %v634_v20, %s2559_s14  ;;  %782 = vrot.lane.b32.xlu1 %v657_v17, %s2559_s14  ;;  %v644_v45 = vpack.c.bf16 %v587_v42, %v587_v42  ;;  %692 = vst.msk [vmem:[#allocation2 + $0x78] sm:$0xf] %vm661_vm2, %v659_v43 }
  0xd7   : > { %768 = vrot.lane.b32.xlu0 %v650_v27, %s2559_s14  ;;  %669 = vst.msk [vmem:[#allocation2 + $0x1c] sm:$0xf] %vm661_vm2, %v636_v44 }
  0xd8   : > { %677 = vst.msk [vmem:[#allocation2 + $0x3c] sm:$0xf] %vm661_vm2, %v644_v45  ;;  %v606_v46 = vpop.f32.mrf.mxu2 }
  0xd9   : > { %v607_v47 = vadd.f32 %v2692_v18, %v606_v46  ;;  %v626_v48 = vpop.f32.mrf.mxu3 }
  0xda   : > { %v627_v49 = vadd.f32 %v2692_v18, %v626_v48 }
  0xdb   : > { %v652_v50 = vpack.c.bf16 %v607_v47, %v607_v47 }
  0xdc   : > { %v660_v51 = vpack.c.bf16 %v627_v49, %v627_v49 }
  0xdd   : > { %685 = vst.msk [vmem:[#allocation2 + $0x5c] sm:$0xf] %vm661_vm2, %v652_v50 }
  0xde   : > { %754 = vrot.lane.b32.xlu2 %v643_v33, %s2559_s14  ;;  %752 = vrot.lane.b32.xlu1 %v642_v21, %s2559_s14  ;;  %693 = vst.msk [vmem:[#allocation2 + $0x7c] sm:$0xf] %vm661_vm2, %v660_v51 }
  0xdf   : > { %738 = vrot.lane.b32.xlu0 %v635_v32, %s2559_s14 }
  0xe6   : > { %772 = vrot.lane.b32.xlu2 %v652_v50, %s2559_s14  ;;  %770 = vrot.lane.b32.xlu1 %v651_v39, %s2559_s14 }
  0xe7   : > { %756 = vrot.lane.b32.xlu0 %v644_v45, %s2559_s14 }
  0xee   : > { %784 = vrot.lane.b32.xlu2 %v658_v30, %s2559_s14  ;;  %740 = vrot.lane.b32.xlu1 %v636_v44, %s2559_s14 }
  0xef   : > { %786 = vrot.lane.b32.xlu0 %v659_v43, %s2559_s14 }
  0xf6   : > { %788 = vrot.lane.b32.xlu1 %v660_v51, %s2559_s14 }
  0xfa   : > { %v743_v18 = vpop.permute.xlu2 %742 }
  0xfb   : > { %830 = vst.msk [vmem:[#allocation3 + $0x20] sm:$0xf] %vm661_vm2, %v743_v18 }
 0x107   : > { %v761_v52 = vpop.permute.xlu2 %760 }
 0x108   : > { %839 = vst.msk [vmem:[#allocation3 + $0x44] sm:$0xf] %vm661_vm2, %v761_v52 }
 0x110   : > { %v779_v53 = vpop.permute.xlu2 %778 }
 0x111   : > { %848 = vst.msk [vmem:[#allocation3 + $0x68] sm:$0xf] %vm661_vm2, %v779_v53  ;;  %v727_v54 = vpop.permute.xlu0 %726 }
 0x112   : > { %822 = vst.msk [vmem:[#allocation3] sm:$0xf] %vm661_vm2, %v727_v54 }
 0x117   : > { %v759_v55 = vpop.permute.xlu1 %758 }
 0x118   : > { %838 = vst.msk [vmem:[#allocation3 + $0x40] sm:$0xf] %vm661_vm2, %v759_v55  ;;  %v749_v56 = vpop.permute.xlu2 %748 }
 0x119   : > { %833 = vst.msk [vmem:[#allocation3 + $0x2c] sm:$0xf] %vm661_vm2, %v749_v56  ;;  %v775_v57 = vpop.permute.xlu0 %774 }
 0x11a   : > { %846 = vst.msk [vmem:[#allocation3 + $0x60] sm:$0xf] %vm661_vm2, %v775_v57 }
 0x120   : > { %v777_v58 = vpop.permute.xlu1 %776  ;;  %v735_v59 = vpop.permute.xlu2 %734 }
 0x121   : > { %847 = vst.msk [vmem:[#allocation3 + $0x64] sm:$0xf] %vm661_vm2, %v777_v58  ;;  %v729_v60 = vpop.permute.xlu0 %728 }
 0x122   : > { %826 = vst.msk [vmem:[#allocation3 + $0x10] sm:$0xf] %vm661_vm2, %v735_v59 }
 0x123   : > { %823 = vst.msk [vmem:[#allocation3 + $0x4] sm:$0xf] %vm661_vm2, %v729_v60 }
 0x128   : > { %v767_v61 = vpop.permute.xlu2 %766  ;;  %v731_v62 = vpop.permute.xlu1 %730 }
 0x129   : > { %842 = vst.msk [vmem:[#allocation3 + $0x50] sm:$0xf] %vm661_vm2, %v767_v61  ;;  %v745_v63 = vpop.permute.xlu0 %744 }
 0x12a   : > { %824 = vst.msk [vmem:[#allocation3 + $0x8] sm:$0xf] %vm661_vm2, %v731_v62 }
 0x12b   : > { %831 = vst.msk [vmem:[#allocation3 + $0x24] sm:$0xf] %vm661_vm2, %v745_v63 }
 0x130   : > { %v737_v0 = vpop.permute.xlu2 %736  ;;  %v747_v1 = vpop.permute.xlu1 %746 }
 0x131   : > { %827 = vst.msk [vmem:[#allocation3 + $0x14] sm:$0xf] %vm661_vm2, %v737_v0  ;;  %v763_v2 = vpop.permute.xlu0 %762 }
 0x132   : > { %832 = vst.msk [vmem:[#allocation3 + $0x28] sm:$0xf] %vm661_vm2, %v747_v1 }
 0x133   : > { %840 = vst.msk [vmem:[#allocation3 + $0x48] sm:$0xf] %vm661_vm2, %v763_v2 }
 0x138   : > { %v755_v3 = vpop.permute.xlu2 %754  ;;  %v733_v4 = vpop.permute.xlu1 %732 }
 0x139   : > { %836 = vst.msk [vmem:[#allocation3 + $0x38] sm:$0xf] %vm661_vm2, %v755_v3  ;;  %v781_v5 = vpop.permute.xlu0 %780 }
 0x13a   : > { %825 = vst.msk [vmem:[#allocation3 + $0xc] sm:$0xf] %vm661_vm2, %v733_v4 }
 0x13b   : > { %849 = vst.msk [vmem:[#allocation3 + $0x6c] sm:$0xf] %vm661_vm2, %v781_v5 }
 0x140   : > { %v773_v6 = vpop.permute.xlu2 %772  ;;  %v765_v7 = vpop.permute.xlu1 %764 }
 0x141   : > { %845 = vst.msk [vmem:[#allocation3 + $0x5c] sm:$0xf] %vm661_vm2, %v773_v6  ;;  %v751_v8 = vpop.permute.xlu0 %750 }
 0x142   : > { %841 = vst.msk [vmem:[#allocation3 + $0x4c] sm:$0xf] %vm661_vm2, %v765_v7 }
 0x143   : > { %834 = vst.msk [vmem:[#allocation3 + $0x30] sm:$0xf] %vm661_vm2, %v751_v8 }
 0x148   : > { %v785_v9 = vpop.permute.xlu2 %784  ;;  %v783_v10 = vpop.permute.xlu1 %782 }
 0x149   : > { %851 = vst.msk [vmem:[#allocation3 + $0x74] sm:$0xf] %vm661_vm2, %v785_v9  ;;  %v769_v11 = vpop.permute.xlu0 %768 }
 0x14a   : > { %850 = vst.msk [vmem:[#allocation3 + $0x70] sm:$0xf] %vm661_vm2, %v783_v10 }
 0x14b   : > { %843 = vst.msk [vmem:[#allocation3 + $0x54] sm:$0xf] %vm661_vm2, %v769_v11 }
 0x150   : > { %v753_v12 = vpop.permute.xlu1 %752 }
 0x151   : > { %835 = vst.msk [vmem:[#allocation3 + $0x34] sm:$0xf] %vm661_vm2, %v753_v12  ;;  %v739_v13 = vpop.permute.xlu0 %738 }
 0x152   : > { %828 = vst.msk [vmem:[#allocation3 + $0x18] sm:$0xf] %vm661_vm2, %v739_v13 }
 0x158   : > { %v771_v14 = vpop.permute.xlu1 %770 }
 0x159   : > { %844 = vst.msk [vmem:[#allocation3 + $0x58] sm:$0xf] %vm661_vm2, %v771_v14  ;;  %v757_v15 = vpop.permute.xlu0 %756 }
 0x15a   : > { %837 = vst.msk [vmem:[#allocation3 + $0x3c] sm:$0xf] %vm661_vm2, %v757_v15 }
 0x160   : > { %v741_v16 = vpop.permute.xlu1 %740 }
 0x161   : > { %829 = vst.msk [vmem:[#allocation3 + $0x1c] sm:$0xf] %vm661_vm2, %v741_v16  ;;  %v787_v17 = vpop.permute.xlu0 %786 }
 0x162   : > { %852 = vst.msk [vmem:[#allocation3 + $0x78] sm:$0xf] %vm661_vm2, %v787_v17 }
 0x168   : > { %v789_v19 = vpop.permute.xlu1 %788 }
 0x169   : > { %853 = vst.msk [vmem:[#allocation3 + $0x7c] sm:$0xf] %vm661_vm2, %v789_v19 }
 0x16a PF: > { %v870_v20 = vld [vmem:[%s3132_s2] sm:$0x3]  ;;  %vm940_vm3 = vcmask 1041408   ;;  %v2316_v23 = vld [vmem:[%s2646_s23 + $0x10] sm:$0xff]  ;;  %vm1113_vm4 = vcmask 261120   ;;  %vm915_vm5 = vcmask 31744  }
 0x16b   : > { %v942_v21 = vsel %vm940_vm3, %v870_v20, 0  ;;  %v2314_v22 = vld [vmem:[%s2646_s23] sm:$0xff]  ;;  %v2337_v25 = vld [vmem:[#allocation2 + $0x78] sm:$0xff]  ;;  %v2328_v29 = vld [vmem:[#allocation2 + $0x30] sm:$0xff] }
 0x16c   : > { %951 = vmatpush.bf16.msra.mxu0 %v942_v21  ;;  %2359 = vmatpush.bf16.msra.mxu1 %v942_v21  ;;  %v2318_v24 = vld [vmem:[%s2646_s23 + $0x20] sm:$0xff]  ;;  %v2329_v26 = vld [vmem:[#allocation2 + $0x38] sm:$0xff]  ;;  %v1184_v27 = vsel %vm1113_vm4, %v2337_v25, 0  ;;  %v2336_v30 = vld [vmem:[#allocation2 + $0x70] sm:$0xff]  ;;  %v1157_v31 = vsel %vm1113_vm4, %v2328_v29, 0 }
 0x16d   : > { %2360 = vmatpush.bf16.msra.mxu2 %v942_v21  ;;  %v1160_v28 = vsel %vm1113_vm4, %v2329_v26, 0  ;;  %v1181_v32 = vsel %vm1113_vm4, %v2336_v30, 0  ;;  %v2327_v33 = vld [vmem:[#allocation2 + $0x28] sm:$0xff]  ;;  %v2317_v36 = vld [vmem:[%s2646_s23 + $0x18] sm:$0xff]  ;;  %v2326_v40 = vld [vmem:[#allocation2 + $0x20] sm:$0xff] }
 0x16e   : > { %v2335_v34 = vld [vmem:[#allocation2 + $0x68] sm:$0xff]  ;;  %v1154_v38 = vsel %vm1113_vm4, %v2327_v33, 0  ;;  %v2334_v41 = vld [vmem:[#allocation2 + $0x60] sm:$0xff]  ;;  %v1151_v42 = vsel %vm1113_vm4, %v2326_v40, 0  ;;  %v2325_v44 = vld [vmem:[#allocation2 + $0x18] sm:$0xff] }
 0x16f   : > { %2127 = vmatmul.msk.bf16.vlgmr.msra.gmra.mxu0 %vm915_vm5, %v2314_v22  ;;  %2129 = vmatmul.msk.bf16.vlgmr.msra.gmra.mxu1 %vm915_vm5, %v2316_v23  ;;  %v2315_v35 = vld [vmem:[%s2646_s23 + $0x8] sm:$0xff]  ;;  %v1178_v39 = vsel %vm1113_vm4, %v2335_v34, 0  ;;  %v1175_v43 = vsel %vm1113_vm4, %v2334_v41, 0  ;;  %v2333_v45 = vld [vmem:[#allocation2 + $0x58] sm:$0xff]  ;;  %v2320_v46 = vld [vmem:[%s2646_s23 + $0x30] sm:$0xff]  ;;  %v1148_v47 = vsel %vm1113_vm4, %v2325_v44, 0 }
 0x170   : > { %2131 = vmatmul.msk.bf16.vlgmr.msra.gmra.mxu2 %vm915_vm5, %v2318_v24  ;;  %1186 = vmatpush.bf16.xpose.msrb.mxu1 %v1160_v28  ;;  %v2319_v37 = vld [vmem:[%s2646_s23 + $0x28] sm:$0xff]  ;;  %v1172_v48 = vsel %vm1113_vm4, %v2333_v45, 0  ;;  %v2324_v49 = vld [vmem:[#allocation2 + $0x10] sm:$0xff]  ;;  %v2321_v54 = vld [vmem:[%s2646_s23 + $0x38] sm:$0xff] }
 0x171   : > { %1235 = vmatpush.bf16.xpose.msrb.mxu2 %v1184_v27  ;;  %v2332_v50 = vld [vmem:[#allocation2 + $0x50] sm:$0xff]  ;;  %v1145_v51 = vsel %vm1113_vm4, %v2324_v49, 0  ;;  %v2323_v52 = vld [vmem:[#allocation2 + $0x8] sm:$0xff]  ;;  %v2330_v57 = vld [vmem:[#allocation2 + $0x40] sm:$0xff] }
 0x172   : > { %v1169_v18 = vsel %vm1113_vm4, %v2332_v50, 0  ;;  %v2331_v53 = vld [vmem:[#allocation2 + $0x48] sm:$0xff]  ;;  %v1142_v55 = vsel %vm1113_vm4, %v2323_v52, 0  ;;  %v2322_v58 = vld [vmem:[#allocation2] sm:$0xff]  ;;  %v1163_v59 = vsel %vm1113_vm4, %v2330_v57, 0  ;;  %v2345_v57 = vld [vmem:[#allocation3 + $0x38] sm:$0xff] }
 0x173   : > { %v1166_v56 = vsel %vm1113_vm4, %v2331_v53, 0  ;;  %v1139_v60 = vsel %vm1113_vm4, %v2322_v58, 0  ;;  %v2421_v62 = vld [vmem:[%s3133_s3] ss:$0 sm:$0xff]  ;;  %1620 = vmatpush.bf16.msrb.mxu0 %v2345_v57  ;;  %2362 = vmatpush.bf16.msra.mxu3 %v2345_v57 }
 0x178   : > { %1187 = vmatpush.bf16.xpose.msrb.mxu1 %v1157_v31 }
 0x179   : > { %1236 = vmatpush.bf16.xpose.msrb.mxu2 %v1181_v32 }
 0x17f   : > { %2128 = vmatmul.msk.bf16.gmra.mxu0 %vm915_vm5, %v2315_v35  ;;  %2130 = vmatmul.msk.bf16.gmra.mxu1 %vm915_vm5, %v2317_v36 }
 0x180   : > { %2132 = vmatmul.msk.bf16.gmra.mxu2 %vm915_vm5, %v2319_v37  ;;  %1188 = vmatpush.bf16.xpose.msrb.mxu1 %v1154_v38 }
 0x181   : > { %1237 = vmatpush.bf16.xpose.msrb.mxu2 %v1178_v39 }
 0x188   : > { %1189 = vmatpush.bf16.xpose.msrb.mxu1 %v1151_v42 }
 0x189   : > { %1238 = vmatpush.bf16.xpose.msrb.mxu2 %v1175_v43 }
 0x190   : > { %2133 = vmatmul.msk.bf16.gmra.mxu2 %vm915_vm5, %v2320_v46  ;;  %1190 = vmatpush.bf16.xpose.msrb.mxu1 %v1148_v47 }
 0x191   : > { %1239 = vmatpush.bf16.xpose.msrb.mxu2 %v1172_v48 }
 0x198   : > { %1191 = vmatpush.bf16.xpose.msrb.mxu1 %v1145_v51 }
 0x199   : > { %1240 = vmatpush.bf16.xpose.msrb.mxu2 %v1169_v18 }
 0x1a0   : > { %2134 = vmatmul.msk.bf16.gmra.mxu2 %vm915_vm5, %v2321_v54  ;;  %1192 = vmatpush.bf16.xpose.msrb.mxu1 %v1142_v55 }
 0x1a1   : > { %1241 = vmatpush.bf16.xpose.msrb.mxu2 %v1166_v56 }
 0x1a8   : > { %1193 = vmatpush.bf16.xpose.msrb.mxu1 %v1139_v60 }
 0x1a9   : > { %1242 = vmatpush.bf16.xpose.msrb.mxu2 %v1163_v59 }
 0x1b0   : > { %2361 = vmatpush.bf16.msra.mxu1 %v2345_v57 }
 0x1ec   : > { %v953_v61 = vpop.f32.mrf.mxu0  ;;  %v963_v4 = vpop.f32.mrf.mxu1 }
 0x1ed   : > { %v954_v0 = vadd.f32 %v2421_v62, %v953_v61  ;;  %v964_v10 = vadd.f32 %v2421_v62, %v963_v4 }
 0x1f3   : > { %v973_v14 = vpop.f32.mrf.mxu2 }
 0x1f4   : > { %v955_v63 = vpop.f32.mrf.mxu0  ;;  %v965_v9 = vpop.f32.mrf.mxu1  ;;  %v974_v22 = vadd.f32 %v2421_v62, %v973_v14 }
 0x1f5   : > { %v956_v1 = vadd.f32 %v2421_v62, %v955_v63  ;;  %v966_v11 = vadd.f32 %v2421_v62, %v965_v9 }
 0x1f7   : > { %v993_v2 = vpack.c.bf16 %v956_v1, %v954_v0  ;;  %v995_v13 = vpack.c.bf16 %v966_v11, %v964_v10  ;;  %v2344_v0 = vld [vmem:[#allocation3 + $0x30] sm:$0xff] }
 0x1f8   : > { %2363 = vmatpush.bf16.msra.mxu1 %v2344_v0  ;;  %1621 = vmatpush.bf16.msrb.mxu0 %v2344_v0 }
 0x1f9   : > { %2199 = vmatmul.msk.bf16.vlgmr.msrb.gmra.mxu1 %vm1113_vm4, %v993_v2  ;;  %2207 = vmatmul.msk.bf16.vlgmr.msrb.gmra.mxu2 %vm1113_vm4, %v993_v2 }
 0x1fa   : > { %2364 = vmatpush.bf16.msra.mxu3 %v2344_v0  ;;  %v2347_v0 = vld [vmem:[#allocation3 + $0x48] sm:$0xff] }
 0x1fb   : > { %v975_v19 = vpop.f32.mrf.mxu2 }
 0x1fc   : > { %v958_v3 = vpop.f32.mrf.mxu0  ;;  %v968_v12 = vpop.f32.mrf.mxu1  ;;  %v976_v23 = vadd.f32 %v2421_v62, %v975_v19 }
 0x1fd   : > { %v959_v6 = vadd.f32 %v2421_v62, %v958_v3  ;;  %v969_v16 = vadd.f32 %v2421_v62, %v968_v12  ;;  %v2342_v12 = vld [vmem:[#allocation3 + $0x20] sm:$0xff] }
 0x1fe   : > { %v997_v24 = vpack.c.bf16 %v976_v23, %v974_v22  ;;  %v2338_v23 = vld [vmem:[#allocation3] sm:$0xff] }
 0x203   : > { %v978_v21 = vpop.f32.mrf.mxu2 }
 0x204   : > { %v960_v5 = vpop.f32.mrf.mxu0  ;;  %v970_v15 = vpop.f32.mrf.mxu1  ;;  %v979_v27 = vadd.f32 %v2421_v62, %v978_v21  ;;  %v2339_v21 = vld [vmem:[#allocation3 + $0x8] sm:$0xff] }
 0x205   : > { %v961_v7 = vadd.f32 %v2421_v62, %v960_v5  ;;  %v971_v17 = vadd.f32 %v2421_v62, %v970_v15  ;;  %v2341_v15 = vld [vmem:[#allocation3 + $0x18] sm:$0xff] }
 0x207   : > { %v994_v8 = vpack.c.bf16 %v961_v7, %v959_v6  ;;  %v996_v20 = vpack.c.bf16 %v971_v17, %v969_v16  ;;  %v2343_v7 = vld [vmem:[#allocation3 + $0x28] sm:$0xff]  ;;  %v2340_v17 = vld [vmem:[#allocation3 + $0x10] sm:$0xff] }
 0x208   : > { %2365 = vmatpush.bf16.msra.mxu1 %v2343_v7  ;;  %1622 = vmatpush.bf16.msrb.mxu0 %v2343_v7 }
 0x209   : > { %2200 = vmatmul.msk.bf16.gmra.mxu1 %vm1113_vm4, %v994_v8  ;;  %2208 = vmatmul.msk.bf16.gmra.mxu2 %vm1113_vm4, %v994_v8 }
 0x20a   : > { %2366 = vmatpush.bf16.msra.mxu3 %v2343_v7 }
 0x20b   : > { %v980_v25 = vpop.f32.mrf.mxu2 }
 0x20c   : > { %v981_v28 = vadd.f32 %v2421_v62, %v980_v25  ;;  %1623 = vmatpush.bf16.msrb.mxu0 %v2342_v12  ;;  %2367 = vmatpush.bf16.msra.mxu1 %v2342_v12  ;;  %v2353_v25 = vld [vmem:[#allocation3 + $0x78] sm:$0xff] }
 0x20e   : > { %v998_v29 = vpack.c.bf16 %v981_v28, %v979_v27  ;;  %2368 = vmatpush.bf16.msra.mxu3 %v2342_v12  ;;  %v2352_v28 = vld [vmem:[#allocation3 + $0x70] sm:$0xff] }
 0x210   : > { %1624 = vmatpush.bf16.msrb.mxu0 %v2341_v15  ;;  %2369 = vmatpush.bf16.msra.mxu1 %v2341_v15 }
 0x212   : > { %2370 = vmatpush.bf16.msra.mxu3 %v2341_v15 }
 0x213   : > { %v983_v26 = vpop.f32.mrf.mxu2 }
 0x214   : > { %v984_v31 = vadd.f32 %v2421_v62, %v983_v26  ;;  %1625 = vmatpush.bf16.msrb.mxu0 %v2340_v17  ;;  %2371 = vmatpush.bf16.msra.mxu1 %v2340_v17 }
 0x216   : > { %2372 = vmatpush.bf16.msra.mxu3 %v2340_v17 }
 0x218   : > { %1626 = vmatpush.bf16.msrb.mxu0 %v2339_v21  ;;  %2373 = vmatpush.bf16.msra.mxu1 %v2339_v21 }
 0x219   : > { %2201 = vmatmul.msk.bf16.gmra.mxu1 %vm1113_vm4, %v995_v13  ;;  %2209 = vmatmul.msk.bf16.gmra.mxu2 %vm1113_vm4, %v995_v13 }
 0x21a   : > { %2374 = vmatpush.bf16.msra.mxu3 %v2339_v21 }
 0x21b   : > { %v985_v30 = vpop.f32.mrf.mxu2 }
 0x21c   : > { %v986_v32 = vadd.f32 %v2421_v62, %v985_v30  ;;  %1627 = vmatpush.bf16.msrb.mxu0 %v2338_v23  ;;  %2375 = vmatpush.bf16.msra.mxu1 %v2338_v23  ;;  %v2351_v30 = vld [vmem:[#allocation3 + $0x68] sm:$0xff] }
 0x21e   : > { %v999_v34 = vpack.c.bf16 %v986_v32, %v984_v31  ;;  %2376 = vmatpush.bf16.msra.mxu3 %v2338_v23 }
 0x220   : > { %1669 = vmatpush.bf16.msra.mxu0 %v2353_v25 }
 0x223   : > { %v988_v33 = vpop.f32.mrf.mxu2 }
 0x224   : > { %v989_v36 = vadd.f32 %v2421_v62, %v988_v33  ;;  %1670 = vmatpush.bf16.msra.mxu0 %v2352_v28 }
 0x228   : > { %1671 = vmatpush.bf16.msra.mxu0 %v2351_v30 }
 0x229   : > { %2202 = vmatmul.msk.bf16.gmra.mxu1 %vm1113_vm4, %v996_v20  ;;  %2210 = vmatmul.msk.bf16.gmra.mxu2 %vm1113_vm4, %v996_v20 }
 0x22b   : > { %v990_v35 = vpop.f32.mrf.mxu2 }
 0x22c   : > { %v991_v37 = vadd.f32 %v2421_v62, %v990_v35 }
 0x22e   : > { %v1000_v38 = vpack.c.bf16 %v991_v37, %v989_v36  ;;  %v2350_v36 = vld [vmem:[#allocation3 + $0x60] sm:$0xff] }
 0x22f   : > { %1672 = vmatpush.bf16.msra.mxu0 %v2350_v36 }
 0x239   : > { %2203 = vmatmul.msk.bf16.gmra.mxu1 %vm1113_vm4, %v997_v24  ;;  %2211 = vmatmul.msk.bf16.gmra.mxu2 %vm1113_vm4, %v997_v24 }
 0x249   : > { %2204 = vmatmul.msk.bf16.gmra.mxu1 %vm1113_vm4, %v998_v29  ;;  %2212 = vmatmul.msk.bf16.gmra.mxu2 %vm1113_vm4, %v998_v29 }
 0x259   : > { %2205 = vmatmul.msk.bf16.gmra.mxu1 %vm1113_vm4, %v999_v34  ;;  %2213 = vmatmul.msk.bf16.gmra.mxu2 %vm1113_vm4, %v999_v34 }
 0x269   : > { %2206 = vmatmul.msk.bf16.gmra.mxu1 %vm1113_vm4, %v1000_v38  ;;  %2214 = vmatmul.msk.bf16.gmra.mxu2 %vm1113_vm4, %v1000_v38 }
 0x276   : > { %v2876_v39 = vpop.f32.mrf.mxu1 }
 0x27c   : > { %v2878_v40 = vpop.f32.mrf.mxu2 }
 0x27d   : > { %v1284_v41 = vmax.f32 %v2876_v39, %v2878_v40 }
 0x27e   : > { %v2882_v42 = vpop.f32.mrf.mxu1 }
 0x27f   : > { %1285 = vmax.xlane.f32.xlu0 %v1284_v41 }
 0x284   : > { %v2884_v43 = vpop.f32.mrf.mxu2 }
 0x285   : > { %v1287_v44 = vmax.f32 %v2882_v42, %v2884_v43 }
 0x286   : > { %v2888_v45 = vpop.f32.mrf.mxu1 }
 0x287   : > { %1288 = vmax.xlane.f32.xlu0 %v1287_v44  ;;  %v2349_v44 = vld [vmem:[#allocation3 + $0x58] sm:$0xff] }
 0x288   : > { %1673 = vmatpush.bf16.msra.mxu0 %v2349_v44 }
 0x28c   : > { %v2890_v46 = vpop.f32.mrf.mxu2 }
 0x28d   : > { %v1290_v47 = vmax.f32 %v2888_v45, %v2890_v46 }
 0x28e   : > { %v2894_v48 = vpop.f32.mrf.mxu1 }
 0x28f   : > { %1291 = vmax.xlane.f32.xlu1 %v1290_v47 }
 0x294   : > { %v2896_v49 = vpop.f32.mrf.mxu2 }
 0x295   : > { %v1293_v50 = vmax.f32 %v2894_v48, %v2896_v49 }
 0x296   : > { %v2900_v51 = vpop.f32.mrf.mxu1 }
 0x297   : > { %1294 = vmax.xlane.f32.xlu1 %v1293_v50  ;;  %v2348_v50 = vld [vmem:[#allocation3 + $0x50] sm:$0xff] }
 0x298   : > { %1674 = vmatpush.bf16.msra.mxu0 %v2348_v50 }
 0x29c   : > { %v2902_v18 = vpop.f32.mrf.mxu2  ;;  %1675 = vmatpush.bf16.msra.mxu0 %v2347_v0 }
 0x29d   : > { %v1296_v52 = vmax.f32 %v2900_v51, %v2902_v18 }
 0x29e   : > { %v2906_v53 = vpop.f32.mrf.mxu1 }
 0x29f   : > { %1297 = vmax.xlane.f32.xlu2 %v1296_v52 }
 0x2a4   : > { %v2908_v54 = vpop.f32.mrf.mxu2 }
 0x2a5   : > { %v1299_v55 = vmax.f32 %v2906_v53, %v2908_v54 }
 0x2a6   : > { %v2912_v56 = vpop.f32.mrf.mxu1 }
 0x2a7   : > { %1300 = vmax.xlane.f32.xlu2 %v1299_v55 }
 0x2ac   : > { %v2914_v58 = vpop.f32.mrf.mxu2 }
 0x2ad   : > { %v1302_v59 = vmax.f32 %v2912_v56, %v2914_v58 }
 0x2ae   : > { %v2918_v60 = vpop.f32.mrf.mxu1 }
 0x2af   : > { %1303 = vmax.xlane.f32.xlu0 %v1302_v59 }
 0x2b4   : > { %v2920_v61 = vpop.f32.mrf.mxu2 }
 0x2b5   : > { %v1305_v62 = vmax.f32 %v2918_v60, %v2920_v61 }
 0x2b6   : > { %v2924_v63 = vpop.f32.mrf.mxu1 }
 0x2b7   : > { %1306 = vmax.xlane.f32.xlu1 %v1305_v62 }
 0x2bc   : > { %v2926_v1 = vpop.f32.mrf.mxu2 }
 0x2bd   : > { %v1308_v2 = vmax.f32 %v2924_v63, %v2926_v1 }
 0x2be   : > { %v2930_v3 = vpop.f32.mrf.mxu1 }
 0x2bf   : > { %1309 = vmax.xlane.f32.xlu2 %v1308_v2 }
 0x2c4   : > { %v2932_v4 = vpop.f32.mrf.mxu2 }
 0x2c5   : > { %v1311_v5 = vmax.f32 %v2930_v3, %v2932_v4 }
 0x2c6   : > { %v2936_v6 = vpop.f32.mrf.mxu1 }
 0x2c7   : > { %1312 = vmax.xlane.f32.xlu0 %v1311_v5 }
 0x2cc   : > { %v2938_v8 = vpop.f32.mrf.mxu2 }
 0x2cd   : > { %v1314_v9 = vmax.f32 %v2936_v6, %v2938_v8 }
 0x2ce   : > { %v2942_v10 = vpop.f32.mrf.mxu1 }
 0x2cf   : > { %1315 = vmax.xlane.f32.xlu1 %v1314_v9 }
 0x2d4   : > { %v2944_v11 = vpop.f32.mrf.mxu2 }
 0x2d5   : > { %v1317_v13 = vmax.f32 %v2942_v10, %v2944_v11 }
 0x2d6   : > { %v2948_v14 = vpop.f32.mrf.mxu1 }
 0x2d7   : > { %1318 = vmax.xlane.f32.xlu2 %v1317_v13 }
 0x2dc   : > { %v2950_v16 = vpop.f32.mrf.mxu2 }
 0x2dd   : > { %v1320_v19 = vmax.f32 %v2948_v14, %v2950_v16 }
 0x2de   : > { %v2954_v20 = vpop.f32.mrf.mxu1 }
 0x2df   : > { %1321 = vmax.xlane.f32.xlu0 %v1320_v19 }
 0x2e4   : > { %v2956_v22 = vpop.f32.mrf.mxu2 }
 0x2e5   : > { %v1323_v24 = vmax.f32 %v2954_v20, %v2956_v22 }
 0x2e6   : > { %v2960_v26 = vpop.f32.mrf.mxu1 }
 0x2e7   : > { %1324 = vmax.xlane.f32.xlu1 %v1323_v24 }
 0x2ec   : > { %v2962_v27 = vpop.f32.mrf.mxu2 }
 0x2ed   : > { %v1326_v29 = vmax.f32 %v2960_v26, %v2962_v27 }
 0x2ee   : > { %v2968_v34 = vpop.f32.mrf.mxu1 }
 0x2ef   : > { %1327 = vmax.xlane.f32.xlu2 %v1326_v29 }
 0x2f2   : > { %v1286_v31 = vpop.xlane.xlu0 %1285 }
 0x2f3   : > { %v1332_v32 = vsub.f32 %v2876_v39, %v1286_v31  ;;  %v1333_v33 = vsub.f32 %v2878_v40, %v1286_v31 }
 0x2f4   : > { %v2970_v35 = vpop.f32.mrf.mxu2 }
 0x2f5   : > { %v1364_v37 = vmul.f32 1.442695, %v1332_v32  ;;  %v1366_v38 = vmul.f32 1.442695, %v1333_v33  ;;  %v1329_v41 = vmax.f32 %v2968_v34, %v2970_v35 }
 0x2f7   : > { %2423 = vpow2.f32 %v1364_v37  ;;  %1330 = vmax.xlane.f32.xlu0 %v1329_v41 }
 0x2f8   : > { %2425 = vpow2.f32 %v1366_v38 }
 0x2fa   : > { %v1289_v47 = vpop.xlane.xlu0 %1288 }
 0x2fb   : > { %v1334_v39 = vsub.f32 %v2882_v42, %v1289_v47  ;;  %v1335_v40 = vsub.f32 %v2884_v43, %v1289_v47  ;;  %v2346_v43 = vld [vmem:[#allocation3 + $0x40] sm:$0xff] }
 0x2fc   : > { %1676 = vmatpush.bf16.msra.mxu0 %v2346_v43 }
 0x2fd   : > { %v2424_v52 = vpop.eup %2423  ;;  %v1368_v55 = vmul.f32 1.442695, %v1334_v39  ;;  %v1370_v57 = vmul.f32 1.442695, %v1335_v40 }
 0x2fe   : > { %v2976_v59 = vpop.eup %2425 }
 0x2ff   : > { %2427 = vpow2.f32 %v1368_v55  ;;  %v2979_v62 = vadd.f32 %v2976_v59, %v2424_v52 }
 0x300   : > { %2429 = vpow2.f32 %v1370_v57 }
 0x302   : > { %v1292_v2 = vpop.xlane.xlu1 %1291 }
 0x303   : > { %v1336_v5 = vsub.f32 %v2888_v45, %v1292_v2  ;;  %v1337_v42 = vsub.f32 %v2890_v46, %v1292_v2 }
 0x305   : > { %v2428_v7 = vpop.eup %2427  ;;  %v1372_v9 = vmul.f32 1.442695, %v1336_v5  ;;  %v1374_v12 = vmul.f32 1.442695, %v1337_v42 }
 0x306   : > { %v2430_v13 = vpop.eup %2429  ;;  %v1476_v15 = vpack.c.bf16 %v2428_v7, %v2424_v52 }
 0x307   : > { %2431 = vpow2.f32 %v1372_v9  ;;  %v2983_v17 = vadd.f32 %v2430_v13, %v2428_v7  ;;  %v1477_v5 = vpack.c.bf16 %v2430_v13, %v2976_v59 }
 0x308   : > { %2433 = vpow2.f32 %v1374_v12  ;;  %1628 = vmatmul.bf16.vlgmr.msrb.gmra.mxu0 %v1476_v15 }
 0x30a   : > { %v1295_v19 = vpop.xlane.xlu1 %1294 }
 0x30b   : > { %v1338_v21 = vsub.f32 %v2894_v48, %v1295_v19  ;;  %v1339_v23 = vsub.f32 %v2896_v49, %v1295_v19 }
 0x30d   : > { %v2432_v45 = vpop.eup %2431  ;;  %v1376_v24 = vmul.f32 1.442695, %v1338_v21  ;;  %v1378_v46 = vmul.f32 1.442695, %v1339_v23 }
 0x30e   : > { %v2987_v25 = vpop.eup %2433 }
 0x30f   : > { %2435 = vpow2.f32 %v1376_v24  ;;  %v1434_v28 = vadd.f32 %v2987_v25, %v2432_v45 }
 0x310   : > { %2437 = vpow2.f32 %v1378_v46 }
 0x311   : > { %1435 = vadd.xlane.f32.xlu1 %v1434_v28 }
 0x312   : > { %v1298_v29 = vpop.xlane.xlu2 %1297 }
 0x313   : > { %v1340_v30 = vsub.f32 %v2900_v51, %v1298_v29  ;;  %v1341_v31 = vsub.f32 %v2902_v18, %v1298_v29 }
 0x315   : > { %v2436_v32 = vpop.eup %2435  ;;  %v1380_v33 = vmul.f32 1.442695, %v1340_v30  ;;  %v1382_v48 = vmul.f32 1.442695, %v1341_v31 }
 0x316   : > { %v2438_v36 = vpop.eup %2437  ;;  %v1478_v49 = vpack.c.bf16 %v2436_v32, %v2432_v45 }
 0x317   : > { %2439 = vpow2.f32 %v1380_v33  ;;  %v1437_v37 = vadd.f32 %v2438_v36, %v2436_v32  ;;  %v1479_v46 = vpack.c.bf16 %v2438_v36, %v2987_v25 }
 0x318   : > { %2441 = vpow2.f32 %v1382_v48  ;;  %1633 = vmatmul.bf16.gmra.mxu0 %v1478_v49 }
 0x319   : > { %1438 = vadd.xlane.f32.xlu2 %v1437_v37 }
 0x31a   : > { %v1301_v38 = vpop.xlane.xlu2 %1300 }
 0x31b   : > { %v1342_v41 = vsub.f32 %v2906_v53, %v1301_v38  ;;  %v1343_v44 = vsub.f32 %v2908_v54, %v1301_v38 }
 0x31d   : > { %v2440_v47 = vpop.eup %2439  ;;  %v1384_v39 = vmul.f32 1.442695, %v1342_v41  ;;  %v1386_v51 = vmul.f32 1.442695, %v1343_v44 }
 0x31e   : > { %v2994_v40 = vpop.eup %2441 }
 0x31f   : > { %2443 = vpow2.f32 %v1384_v39  ;;  %v1440_v18 = vadd.f32 %v2994_v40, %v2440_v47 }
 0x320   : > { %2445 = vpow2.f32 %v1386_v51 }
 0x321   : > { %1441 = vadd.xlane.f32.xlu0 %v1440_v18 }
 0x322   : > { %v1304_v50 = vpop.xlane.xlu0 %1303 }
 0x323   : > { %v1344_v52 = vsub.f32 %v2912_v56, %v1304_v50  ;;  %v1345_v55 = vsub.f32 %v2914_v58, %v1304_v50 }
 0x325   : > { %v2444_v57 = vpop.eup %2443  ;;  %v1388_v0 = vmul.f32 1.442695, %v1344_v52  ;;  %v1390_v53 = vmul.f32 1.442695, %v1345_v55 }
 0x326   : > { %v2446_v2 = vpop.eup %2445  ;;  %v1480_v54 = vpack.c.bf16 %v2444_v57, %v2440_v47 }
 0x327   : > { %2447 = vpow2.f32 %v1388_v0  ;;  %v1443_v42 = vadd.f32 %v2446_v2, %v2444_v57  ;;  %v1481_v44 = vpack.c.bf16 %v2446_v2, %v2994_v40  ;;  %v2355_v40 = vld [vmem:[%s3136_s6 + $0x8] sm:$0xff] }
 0x328   : > { %2449 = vpow2.f32 %v1390_v53  ;;  %1638 = vmatmul.bf16.vlgmr.msra.gmra.mxu1 %v1480_v54  ;;  %1677 = vmatmul.bf16.vlgmr.msra.gmra.mxu0 %v1477_v5 }
 0x329   : > { %1444 = vadd.xlane.f32.xlu1 %v1443_v42  ;;  %2377 = vmatpush.bf16.msrb.mxu3 %v2355_v40 }
 0x32a   : > { %v1307_v43 = vpop.xlane.xlu1 %1306  ;;  %1808 = vmatpush.bf16.msrb.mxu0 %v2355_v40 }
 0x32b   : > { %v1346_v7 = vsub.f32 %v2918_v60, %v1307_v43  ;;  %v1347_v56 = vsub.f32 %v2920_v61, %v1307_v43 }
 0x32d   : > { %v2448_v9 = vpop.eup %2447  ;;  %v1392_v58 = vmul.f32 1.442695, %v1346_v7  ;;  %v1394_v12 = vmul.f32 1.442695, %v1347_v56 }
 0x32e   : > { %v3002_v15 = vpop.eup %2449 }
 0x32f   : > { %2451 = vpow2.f32 %v1392_v58  ;;  %v1446_v19 = vadd.f32 %v3002_v15, %v2448_v9 }
 0x330   : > { %2453 = vpow2.f32 %v1394_v12 }
 0x331   : > { %1447 = vadd.xlane.f32.xlu2 %v1446_v19 }
 0x332   : > { %v1310_v59 = vpop.xlane.xlu2 %1309 }
 0x333   : > { %v1348_v13 = vsub.f32 %v2924_v63, %v1310_v59  ;;  %v1349_v21 = vsub.f32 %v2926_v1, %v1310_v59 }
 0x335   : > { %v2452_v23 = vpop.eup %2451  ;;  %v1396_v45 = vmul.f32 1.442695, %v1348_v13  ;;  %v1398_v60 = vmul.f32 1.442695, %v1349_v21 }
 0x336   : > { %v2454_v24 = vpop.eup %2453  ;;  %v1482_v61 = vpack.c.bf16 %v2452_v23, %v2448_v9 }
 0x337   : > { %2455 = vpow2.f32 %v1396_v45  ;;  %v1449_v28 = vadd.f32 %v2454_v24, %v2452_v23  ;;  %v1483_v42 = vpack.c.bf16 %v2454_v24, %v3002_v15 }
 0x338   : > { %2457 = vpow2.f32 %v1398_v60  ;;  %1643 = vmatmul.bf16.vlgmr.msra.gmra.mxu3 %v1482_v61  ;;  %1682 = vmatmul.bf16.gmra.mxu0 %v1479_v46 }
 0x339   : > { %1450 = vadd.xlane.f32.xlu0 %v1449_v28 }
 0x33a   : > { %v1313_v29 = vpop.xlane.xlu0 %1312 }
 0x33b   : > { %v1350_v30 = vsub.f32 %v2930_v3, %v1313_v29  ;;  %v1351_v63 = vsub.f32 %v2932_v4, %v1313_v29 }
 0x33d   : > { %v2456_v31 = vpop.eup %2455  ;;  %v1400_v1 = vmul.f32 1.442695, %v1350_v30  ;;  %v1402_v32 = vmul.f32 1.442695, %v1351_v63 }
 0x33e   : > { %v3010_v33 = vpop.eup %2457 }
 0x33f   : > { %2459 = vpow2.f32 %v1400_v1  ;;  %v1452_v48 = vadd.f32 %v3010_v33, %v2456_v31 }
 0x340   : > { %2461 = vpow2.f32 %v1402_v32 }
 0x341   : > { %1453 = vadd.xlane.f32.xlu1 %v1452_v48 }
 0x342   : > { %v1316_v25 = vpop.xlane.xlu1 %1315 }
 0x343   : > { %v1352_v36 = vsub.f32 %v2936_v6, %v1316_v25  ;;  %v1353_v49 = vsub.f32 %v2938_v8, %v1316_v25 }
 0x345   : > { %v2460_v37 = vpop.eup %2459  ;;  %v1404_v38 = vmul.f32 1.442695, %v1352_v36  ;;  %v1406_v3 = vmul.f32 1.442695, %v1353_v49 }
 0x346   : > { %v2462_v41 = vpop.eup %2461  ;;  %v1484_v4 = vpack.c.bf16 %v2460_v37, %v2456_v31 }
 0x347   : > { %2463 = vpow2.f32 %v1404_v38  ;;  %v1455_v47 = vadd.f32 %v2462_v41, %v2460_v37 }
 0x348   : > { %2465 = vpow2.f32 %v1406_v3  ;;  %1648 = vmatmul.bf16.gmra.mxu3 %v1484_v4  ;;  %1687 = vmatmul.bf16.gmra.mxu0 %v1481_v44 }
 0x349   : > { %1456 = vadd.xlane.f32.xlu2 %v1455_v47 }
 0x34a   : > { %v1319_v39 = vpop.xlane.xlu2 %1318 }
 0x34b   : > { %v1354_v51 = vsub.f32 %v2942_v10, %v1319_v39  ;;  %v1355_v6 = vsub.f32 %v2944_v11, %v1319_v39 }
 0x34d   : > { %v2464_v18 = vpop.eup %2463  ;;  %v1408_v8 = vmul.f32 1.442695, %v1354_v51  ;;  %v1410_v50 = vmul.f32 1.442695, %v1355_v6 }
 0x34e   : > { %v3018_v52 = vpop.eup %2465 }
 0x34f   : > { %2467 = vpow2.f32 %v1408_v8  ;;  %v1458_v55 = vadd.f32 %v3018_v52, %v2464_v18 }
 0x350   : > { %2469 = vpow2.f32 %v1410_v50 }
 0x351   : > { %1459 = vadd.xlane.f32.xlu0 %v1458_v55 }
 0x352   : > { %v1322_v57 = vpop.xlane.xlu0 %1321 }
 0x353   : > { %v1356_v0 = vsub.f32 %v2948_v14, %v1322_v57  ;;  %v1357_v10 = vsub.f32 %v2950_v16, %v1322_v57 }
 0x355   : > { %v2468_v11 = vpop.eup %2467  ;;  %v1412_v53 = vmul.f32 1.442695, %v1356_v0  ;;  %v1414_v2 = vmul.f32 1.442695, %v1357_v10 }
 0x356   : > { %v2470_v54 = vpop.eup %2469  ;;  %v1486_v5 = vpack.c.bf16 %v2468_v11, %v2464_v18 }
 0x357   : > { %2471 = vpow2.f32 %v1412_v53  ;;  %v1461_v43 = vadd.f32 %v2470_v54, %v2468_v11  ;;  %v1487_v32 = vpack.c.bf16 %v2470_v54, %v3018_v52 }
 0x358   : > { %2473 = vpow2.f32 %v1414_v2  ;;  %1653 = vmatmul.bf16.gmra.mxu3 %v1486_v5  ;;  %1692 = vmatmul.bf16.gmra.mxu0 %v1483_v42 }
 0x359   : > { %1462 = vadd.xlane.f32.xlu1 %v1461_v43 }
 0x35a   : > { %v1325_v7 = vpop.xlane.xlu1 %1324 }
 0x35b   : > { %v1358_v14 = vsub.f32 %v2954_v20, %v1325_v7  ;;  %v1359_v16 = vsub.f32 %v2956_v22, %v1325_v7  ;;  %v1485_v22 = vpack.c.bf16 %v2462_v41, %v3010_v33 }
 0x35d   : > { %v2472_v56 = vpop.eup %2471  ;;  %v1416_v9 = vmul.f32 1.442695, %v1358_v14  ;;  %v1418_v58 = vmul.f32 1.442695, %v1359_v16 }
 0x35e   : > { %v2474_v12 = vpop.eup %2473 }
 0x35f   : > { %2475 = vpow2.f32 %v1416_v9  ;;  %v1464_v19 = vadd.f32 %v2474_v12, %v2472_v56 }
 0x360   : > { %2477 = vpow2.f32 %v1418_v58 }
 0x361   : > { %1465 = vadd.xlane.f32.xlu2 %v1464_v19 }
 0x362   : > { %v1328_v15 = vpop.xlane.xlu2 %1327 }
 0x363   : > { %v1360_v59 = vsub.f32 %v2960_v26, %v1328_v15  ;;  %v1361_v13 = vsub.f32 %v2962_v27, %v1328_v15 }
 0x365   : > { %v2476_v21 = vpop.eup %2475  ;;  %v1420_v23 = vmul.f32 1.442695, %v1360_v59  ;;  %v1422_v45 = vmul.f32 1.442695, %v1361_v13 }
 0x366   : > { %v2478_v60 = vpop.eup %2477  ;;  %v1488_v20 = vpack.c.bf16 %v2476_v21, %v2472_v56 }
 0x367   : > { %2479 = vpow2.f32 %v1420_v23  ;;  %v1467_v24 = vadd.f32 %v2478_v60, %v2476_v21  ;;  %v1489_v25 = vpack.c.bf16 %v2478_v60, %v2474_v12 }
 0x368   : > { %2481 = vpow2.f32 %v1422_v45  ;;  %1658 = vmatmul.bf16.gmra.mxu3 %v1488_v20  ;;  %1697 = vmatmul.bf16.gmra.mxu0 %v1485_v22 }
 0x369   : > { %1468 = vadd.xlane.f32.xlu0 %v1467_v24 }
 0x36a   : > { %v1331_v61 = vpop.xlane.xlu0 %1330 }
 0x36b   : > { %v1362_v46 = vsub.f32 %v2968_v34, %v1331_v61  ;;  %v1363_v26 = vsub.f32 %v2970_v35, %v1331_v61  ;;  %v2354_v34 = vld [vmem:[%s3136_s6] sm:$0xff] }
 0x36c   : > { %2378 = vmatpush.bf16.msrb.mxu3 %v2354_v34  ;;  %1809 = vmatpush.bf16.msrb.mxu0 %v2354_v34 }
 0x36d   : > { %v2480_v28 = vpop.eup %2479  ;;  %v1424_v27 = vmul.f32 1.442695, %v1362_v46  ;;  %v1426_v29 = vmul.f32 1.442695, %v1363_v26 }
 0x36e   : > { %v2482_v30 = vpop.eup %2481 }
 0x36f   : > { %2483 = vpow2.f32 %v1424_v27  ;;  %v1470_v63 = vadd.f32 %v2482_v30, %v2480_v28 }
 0x370   : > { %2485 = vpow2.f32 %v1426_v29 }
 0x371   : > { %1471 = vadd.xlane.f32.xlu1 %v1470_v63  ;;  %1429 = vadd.xlane.f32.xlu0 %v2979_v62 }
 0x375   : > { %v2484_v31 = vpop.eup %2483 }
 0x376   : > { %v2486_v1 = vpop.eup %2485  ;;  %v1490_v33 = vpack.c.bf16 %v2484_v31, %v2480_v28 }
 0x377   : > { %v1473_v48 = vadd.f32 %v2486_v1, %v2484_v31  ;;  %v1491_v49 = vpack.c.bf16 %v2486_v1, %v2482_v30 }
 0x378   : > { %1702 = vmatmul.bf16.gmra.mxu0 %v1487_v32  ;;  %1663 = vmatmul.bf16.gmra.mxu3 %v1490_v33 }
 0x379   : > { %1432 = vadd.xlane.f32.xlu1 %v2983_v17  ;;  %1474 = vadd.xlane.f32.xlu2 %v1473_v48 }
 0x384   : > { %v1436_v4 = vpop.xlane.xlu1 %1435 }
 0x385   : > { %v1629_v35 = vpop.f32.mrf.mxu0  ;;  %2487 = vrcp.f32 %v1436_v4 }
 0x388   : > { %1707 = vmatmul.bf16.gmra.mxu0 %v1489_v25 }
 0x38b   : > { %v2488_v6 = vpop.eup %2487 }
 0x38c   : > { %v1439_v47 = vpop.xlane.xlu2 %1438 }
 0x38d   : > { %v1631_v62 = vpop.f32.mrf.mxu0  ;;  %2489 = vrcp.f32 %v1439_v47 }
 0x393   : > { %v2490_v8 = vpop.eup %2489 }
 0x394   : > { %v1442_v0 = vpop.xlane.xlu0 %1441 }
 0x395   : > { %v1634_v36 = vpop.f32.mrf.mxu0  ;;  %2491 = vrcp.f32 %v1442_v0 }
 0x398   : > { %1712 = vmatmul.bf16.gmra.mxu0 %v1491_v49 }
 0x39b   : > { %v2492_v42 = vpop.eup %2491 }
 0x39c   : > { %v1445_v11 = vpop.xlane.xlu1 %1444 }
 0x39d   : > { %v1636_v37 = vpop.f32.mrf.mxu0  ;;  %2493 = vrcp.f32 %v1445_v11 }
 0x3a3   : > { %v2494_v14 = vpop.eup %2493 }
 0x3a4   : > { %v1448_v12 = vpop.xlane.xlu2 %1447 }
 0x3a5   : > { %v1678_v38 = vpop.f32.mrf.mxu0  ;;  %v1639_v55 = vpop.f32.mrf.mxu1  ;;  %2495 = vrcp.f32 %v1448_v12 }
 0x3a6   : > { %v3040_v3 = vadd.f32 %v1678_v38, %v1629_v35 }
 0x3ab   : > { %v2496_v45 = vpop.eup %2495 }
 0x3ac   : > { %v1451_v43 = vpop.xlane.xlu0 %1450 }
 0x3ad   : > { %v1680_v41 = vpop.f32.mrf.mxu0  ;;  %v1641_v53 = vpop.f32.mrf.mxu1  ;;  %2497 = vrcp.f32 %v1451_v43 }
 0x3ae   : > { %v3042_v17 = vadd.f32 %v1680_v41, %v1631_v62 }
 0x3b3   : > { %v2498_v22 = vpop.eup %2497 }
 0x3b4   : > { %v1454_v58 = vpop.xlane.xlu1 %1453 }
 0x3b5   : > { %v1683_v44 = vpop.f32.mrf.mxu0  ;;  %2499 = vrcp.f32 %v1454_v58 }
 0x3b6   : > { %v1684_v39 = vadd.f32 %v1683_v44, %v1634_v36 }
 0x3b8   : > { %v1736_v50 = vmul.f32 %v2488_v6, %v1684_v39 }
 0x3bb   : > { %v1644_v57 = vpop.f32.mrf.mxu3  ;;  %v2500_v33 = vpop.eup %2499 }
 0x3bc   : > { %v1457_v29 = vpop.xlane.xlu2 %1456 }
 0x3bd   : > { %v1685_v51 = vpop.f32.mrf.mxu0  ;;  %2501 = vrcp.f32 %v1457_v29 }
 0x3be   : > { %v1686_v18 = vadd.f32 %v1685_v51, %v1636_v37 }
 0x3c0   : > { %v1737_v52 = vmul.f32 %v2490_v8, %v1686_v18 }
 0x3c2   : > { %v1751_v40 = vpack.c.bf16 %v1737_v52, %v1736_v50 }
 0x3c3   : > { %v1646_v54 = vpop.f32.mrf.mxu3  ;;  %v2502_v34 = vpop.eup %2501 }
 0x3c4   : > { %2288 = vmatmul.msk.bf16.vlgmr.msrb.gmra.mxu3 %vm1113_vm4, %v1751_v40  ;;  %v1460_v15 = vpop.xlane.xlu0 %1459 }
 0x3c5   : > { %v1688_v10 = vpop.f32.mrf.mxu0 }
 0x3c6   : > { %v1689_v2 = vadd.f32 %v1688_v10, %v1639_v55 }
 0x3c8   : > { %v1738_v16 = vmul.f32 %v2492_v42, %v1689_v2 }
 0x3cb   : > { %v1649_v59 = vpop.f32.mrf.mxu3 }
 0x3cc   : > { %v1463_v13 = vpop.xlane.xlu1 %1462 }
 0x3cd   : > { %v1690_v5 = vpop.f32.mrf.mxu0 }
 0x3ce   : > { %v1691_v7 = vadd.f32 %v1690_v5, %v1641_v53 }
 0x3d0   : > { %v1739_v56 = vmul.f32 %v2494_v14, %v1691_v7 }
 0x3d2   : > { %v1752_v9 = vpack.c.bf16 %v1739_v56, %v1738_v16 }
 0x3d3   : > { %v1651_v46 = vpop.f32.mrf.mxu3 }
 0x3d4   : > { %2289 = vmatmul.msk.bf16.gmra.mxu3 %vm1113_vm4, %v1752_v9 }
 0x3d5   : > { %v1693_v19 = vpop.f32.mrf.mxu0 }
 0x3d6   : > { %v1694_v21 = vadd.f32 %v1693_v19, %v1644_v57 }
 0x3d8   : > { %v1740_v24 = vmul.f32 %v2496_v45, %v1694_v21  ;;  %v3058_v21 = vld [vmem:[%s3137_s7] ss:$0 sm:$0xff] }
 0x3db   : > { %v1654_v63 = vpop.f32.mrf.mxu3 }
 0x3dc   : > { %v1469_v60 = vpop.xlane.xlu0 %1468 }
 0x3dd   : > { %v1695_v23 = vpop.f32.mrf.mxu0 }
 0x3de   : > { %v1696_v20 = vadd.f32 %v1695_v23, %v1646_v54 }
 0x3e0   : > { %v1741_v61 = vmul.f32 %v2498_v22, %v1696_v20 }
 0x3e2   : > { %v1753_v26 = vpack.c.bf16 %v1741_v61, %v1740_v24 }
 0x3e3   : > { %v1656_v41 = vpop.f32.mrf.mxu3 }
 0x3e4   : > { %v1472_v28 = vpop.xlane.xlu1 %1471  ;;  %2290 = vmatmul.msk.bf16.gmra.mxu3 %vm1113_vm4, %v1753_v26  ;;  %v1430_v30 = vpop.xlane.xlu0 %1429  ;;  %v858_v26 = vld [vmem:[%s2646_s23 + $0x10] sm:$0xff]  }
 0x3e5   : > { %v1698_v27 = vpop.f32.mrf.mxu0  ;;  %2503 = vrcp.f32 %v1430_v30 }
 0x3e6   : > { %v1699_v31 = vadd.f32 %v1698_v27, %v1649_v59 }
 0x3e8   : > { %v1742_v35 = vmul.f32 %v2500_v33, %v1699_v31  ;;  %v860_v33 = vld [vmem:[%s2646_s23 + $0x18] sm:$0xff]  }
 0x3eb   : > { %v2504_v62 = vpop.eup %2503  ;;  %v1659_v8 = vpop.f32.mrf.mxu3 }
 0x3ec   : > { %v1433_v1 = vpop.xlane.xlu1 %1432  ;;  %v1734_v37 = vmul.f32 %v2504_v62, %v3040_v3  ;;  %v1858_v62 = vunpack.c.h.bf16 %v860_v33 }
 0x3ed   : > { %2505 = vrcp.f32 %v1433_v1  ;;  %v1700_v32 = vpop.f32.mrf.mxu0 }
 0x3ee   : > { %v1701_v48 = vadd.f32 %v1700_v32, %v1651_v46  ;;  %2507 = vrcp.f32 %v1460_v15 }
 0x3ef   : > { %2509 = vrcp.f32 %v1463_v13  ;;  %v856_v13 = vld [vmem:[%s2646_s23 + $0x8] sm:$0xff]  }
 0x3f0   : > { %v1743_v25 = vmul.f32 %v2502_v34, %v1701_v48  ;;  %v1853_v23 = vunpack.c.l.bf16 %v856_v13  ;;  %v1854_v22 = vunpack.c.h.bf16 %v856_v13  ;;  %v1857_v48 = vunpack.c.l.bf16 %v860_v33  ;;  %v868_v13 = vld [vmem:[%s2646_s23 + $0x38] sm:$0xff]  }
 0x3f2   : > { %v1754_v36 = vpack.c.bf16 %v1743_v25, %v1742_v35 }
 0x3f3   : > { %v2506_v49 = vpop.eup %2505  ;;  %v1661_v40 = vpop.f32.mrf.mxu3 }
 0x3f4   : > { %v1735_v38 = vmul.f32 %v2506_v49, %v3042_v17  ;;  %2291 = vmatmul.msk.bf16.gmra.mxu3 %vm1113_vm4, %v1754_v36  ;;  %v2508_v51 = vpop.eup %2507  ;;  %v1466_v17 = vpop.xlane.xlu2 %1465 }
 0x3f5   : > { %v1703_v4 = vpop.f32.mrf.mxu0  ;;  %v2510_v18 = vpop.eup %2509  ;;  %2511 = vrcp.f32 %v1466_v17 }
 0x3f6   : > { %v1750_v44 = vpack.c.bf16 %v1735_v38, %v1734_v37  ;;  %v1704_v47 = vadd.f32 %v1703_v4, %v1654_v63  ;;  %2513 = vrcp.f32 %v1469_v60  ;;  %v1856_v63 = vunpack.c.h.bf16 %v858_v26  ;;  %v854_v37 = vld [vmem:[%s2646_s23] sm:$0xff]  }
 0x3f7   : > { %2515 = vrcp.f32 %v1472_v28  ;;  %v1855_v28 = vunpack.c.l.bf16 %v858_v26  ;;  %v1851_v4 = vunpack.c.l.bf16 %v854_v37 }
 0x3f8   : > { %2287 = vmatmul.msk.bf16.vlgmr.msrb.gmra.mxu0 %vm1113_vm4, %v1750_v44  ;;  %v1744_v50 = vmul.f32 %v2508_v51, %v1704_v47 }
 0x3fb   : > { %v2512_v10 = vpop.eup %2511  ;;  %v1664_v42 = vpop.f32.mrf.mxu3 }
 0x3fc   : > { %v2514_v53 = vpop.eup %2513  ;;  %v1475_v7 = vpop.xlane.xlu2 %1474 }
 0x3fd   : > { %v1705_v39 = vpop.f32.mrf.mxu0  ;;  %2517 = vrcp.f32 %v1475_v7  ;;  %v2516_v9 = vpop.eup %2515 }
 0x3fe   : > { %v1706_v6 = vadd.f32 %v1705_v39, %v1656_v41  ;;  %v862_v41 = vld [vmem:[%s2646_s23 + $0x20] sm:$0xff]  }
 0x3ff   : > { %v1859_v39 = vunpack.c.l.bf16 %v862_v41  ;;  %v1860_v17 = vunpack.c.h.bf16 %v862_v41 }
 0x400   : > { %v1745_v52 = vmul.f32 %v2510_v18, %v1706_v6 }
 0x402   : > { %v1755_v3 = vpack.c.bf16 %v1745_v52, %v1744_v50  ;;  %v1852_v50 = vunpack.c.h.bf16 %v854_v37 }
 0x403   : > { %v1666_v16 = vpop.f32.mrf.mxu3  ;;  %v2518_v12 = vpop.eup %2517 }
 0x404   : > { %2292 = vmatmul.msk.bf16.gmra.mxu3 %vm1113_vm4, %v1755_v3 }
 0x405   : > { %v1708_v55 = vpop.f32.mrf.mxu0 }
 0x406   : > { %v1709_v57 = vadd.f32 %v1708_v55, %v1659_v8 }
 0x408   : > { %v1746_v2 = vmul.f32 %v2512_v10, %v1709_v57  ;;  %v864_v10 = vld [vmem:[%s2646_s23 + $0x28] sm:$0xff]  }
 0x40d   : > { %v1710_v0 = vpop.f32.mrf.mxu0 }
 0x40e   : > { %v1711_v11 = vadd.f32 %v1710_v0, %v1661_v40 }
 0x410   : > { %v1747_v54 = vmul.f32 %v2514_v53, %v1711_v11  ;;  %v1861_v11 = vunpack.c.l.bf16 %v864_v10 }
 0x412   : > { %v1756_v5 = vpack.c.bf16 %v1747_v54, %v1746_v2 }
 0x414   : > { %2293 = vmatmul.msk.bf16.gmra.mxu3 %vm1113_vm4, %v1756_v5  ;;  %v1862_v5 = vunpack.c.h.bf16 %v864_v10 }
 0x415   : > { %v1713_v43 = vpop.f32.mrf.mxu0 }
 0x416   : > { %v1714_v14 = vadd.f32 %v1713_v43, %v1664_v42 }
 0x418   : > { %v1748_v19 = vmul.f32 %v2516_v9, %v1714_v14  ;;  %v866_v14 = vld [vmem:[%s2646_s23 + $0x30] sm:$0xff]  }
 0x41d   : > { %v1715_v56 = vpop.f32.mrf.mxu0 }
 0x41e   : > { %v1716_v58 = vadd.f32 %v1715_v56, %v1666_v16  ;;  %v1863_v16 = vunpack.c.l.bf16 %v866_v14 }
 0x420   : > { %v1749_v15 = vmul.f32 %v2518_v12, %v1716_v58  ;;  %v1864_v12 = vunpack.c.h.bf16 %v866_v14 }
 0x422   : > { %v1757_v59 = vpack.c.bf16 %v1749_v15, %v1748_v19 }
 0x424   : > { %2294 = vmatmul.msk.bf16.gmra.mxu3 %vm1113_vm4, %v1757_v59 }
 0x447   : > { %v1816_v45 = vpop.f32.mrf.mxu3 }
 0x448   : > { %v1817_v60 = vadd.f32 %v3058_v21, %v1816_v45 }
 0x44a   : > { %v1869_v20 = vadd.f32 %v1853_v23, %v1817_v60  ;;  %v1865_v23 = vunpack.c.l.bf16 %v868_v13 }
 0x44c   : > { %1885 = vst.msk [vmem:[%s2651_s26 + $0x10] sm:$0xff] %vm915_vm5, %v1869_v20 }
 0x44f   : > { %v1818_v24 = vpop.f32.mrf.mxu3 }
 0x450   : > { %v1819_v61 = vadd.f32 %v3058_v21, %v1818_v24 }
 0x452   : > { %v1870_v46 = vadd.f32 %v1854_v22, %v1819_v61  ;;  %v1866_v22 = vunpack.c.h.bf16 %v868_v13 }
 0x454   : > { %1886 = vst.msk [vmem:[%s2651_s26 + $0x18] sm:$0xff] %vm915_vm5, %v1870_v46 }
 0x457   : > { %v1821_v27 = vpop.f32.mrf.mxu3 }
 0x458   : > { %v1822_v29 = vadd.f32 %v3058_v21, %v1821_v27 }
 0x45a   : > { %v1871_v30 = vadd.f32 %v1855_v28, %v1822_v29 }
 0x45c   : > { %1887 = vst.msk [vmem:[%s2651_s26 + $0x20] sm:$0xff] %vm915_vm5, %v1871_v30 }
 0x45f   : > { %v1823_v31 = vpop.f32.mrf.mxu3 }
 0x460   : > { %v1824_v1 = vadd.f32 %v3058_v21, %v1823_v31 }
 0x462   : > { %v1872_v32 = vadd.f32 %v1856_v63, %v1824_v1 }
 0x464   : > { %1888 = vst.msk [vmem:[%s2651_s26 + $0x28] sm:$0xff] %vm915_vm5, %v1872_v32 }
 0x467   : > { %v1826_v34 = vpop.f32.mrf.mxu3 }
 0x468   : > { %v1827_v35 = vadd.f32 %v3058_v21, %v1826_v34 }
 0x46a   : > { %v1873_v25 = vadd.f32 %v1857_v48, %v1827_v35 }
 0x46c   : > { %1889 = vst.msk [vmem:[%s2651_s26 + $0x30] sm:$0xff] %vm915_vm5, %v1873_v25 }
 0x46f   : > { %v1828_v36 = vpop.f32.mrf.mxu3 }
 0x470   : > { %v1829_v49 = vadd.f32 %v3058_v21, %v1828_v36 }
 0x472   : > { %v1874_v38 = vadd.f32 %v1858_v62, %v1829_v49 }
 0x474   : > { %1890 = vst.msk [vmem:[%s2651_s26 + $0x38] sm:$0xff] %vm915_vm5, %v1874_v38 }
 0x475   : > { %v1811_v44 = vpop.f32.mrf.mxu0 }
 0x476   : > { %v1812_v47 = vadd.f32 %v3058_v21, %v1811_v44 }
 0x477   : > { %v1831_v51 = vpop.f32.mrf.mxu3 }
 0x478   : > { %v1867_v6 = vadd.f32 %v1851_v4, %v1812_v47  ;;  %v1832_v18 = vadd.f32 %v3058_v21, %v1831_v51 }
 0x47a   : > { %1883 = vst.msk [vmem:[%s2651_s26] sm:$0xff] %vm915_vm5, %v1867_v6  ;;  %v1875_v8 = vadd.f32 %v1859_v39, %v1832_v18 }
 0x47c   : > { %1891 = vst.msk [vmem:[%s2651_s26 + $0x40] sm:$0xff] %vm915_vm5, %v1875_v8 }
 0x47d   : > { %v1813_v52 = vpop.f32.mrf.mxu0 }
 0x47e   : > { %v1814_v3 = vadd.f32 %v3058_v21, %v1813_v52 }
 0x47f   : > { %v1833_v55 = vpop.f32.mrf.mxu3 }
 0x480   : > { %v1868_v40 = vadd.f32 %v1852_v50, %v1814_v3  ;;  %v1834_v57 = vadd.f32 %v3058_v21, %v1833_v55 }
 0x482   : > { %1884 = vst.msk [vmem:[%s2651_s26 + $0x8] sm:$0xff] %vm915_vm5, %v1868_v40  ;;  %v1876_v0 = vadd.f32 %v1860_v17, %v1834_v57 }
 0x484   : > { %1892 = vst.msk [vmem:[%s2651_s26 + $0x48] sm:$0xff] %vm915_vm5, %v1876_v0 }
 0x487   : > { %v1836_v53 = vpop.f32.mrf.mxu3 }
 0x488   : > { %v1837_v2 = vadd.f32 %v3058_v21, %v1836_v53 }
 0x48a   : > { %v1877_v54 = vadd.f32 %v1861_v11, %v1837_v2 }
 0x48c   : > { %1893 = vst.msk [vmem:[%s2651_s26 + $0x50] sm:$0xff] %vm915_vm5, %v1877_v54 }
 0x48f   : > { %v1838_v42 = vpop.f32.mrf.mxu3 }
 0x490   : > { %v1839_v43 = vadd.f32 %v3058_v21, %v1838_v42 }
 0x492   : > { %v1878_v7 = vadd.f32 %v1862_v5, %v1839_v43 }
 0x494   : > { %1894 = vst.msk [vmem:[%s2651_s26 + $0x58] sm:$0xff] %vm915_vm5, %v1878_v7 }
 0x497   : > { %v1841_v56 = vpop.f32.mrf.mxu3 }
 0x498   : > { %v1842_v9 = vadd.f32 %v3058_v21, %v1841_v56 }
 0x49a   : > { %v1879_v58 = vadd.f32 %v1863_v16, %v1842_v9 }
 0x49c   : > { %1895 = vst.msk [vmem:[%s2651_s26 + $0x60] sm:$0xff] %vm915_vm5, %v1879_v58 }
 0x49f   : > { %v1843_v19 = vpop.f32.mrf.mxu3 }
 0x4a0   : > { %v1844_v15 = vadd.f32 %v3058_v21, %v1843_v19 }
 0x4a2   : > { %v1880_v59 = vadd.f32 %v1864_v12, %v1844_v15 }
 0x4a4   : > { %1896 = vst.msk [vmem:[%s2651_s26 + $0x68] sm:$0xff] %vm915_vm5, %v1880_v59 }
 0x4a7   : > { %v1846_v45 = vpop.f32.mrf.mxu3 }
 0x4a8   : > { %v1847_v60 = vadd.f32 %v3058_v21, %v1846_v45 }
 0x4aa   : > { %v1881_v20 = vadd.f32 %v1865_v23, %v1847_v60 }
 0x4ac   : > { %1897 = vst.msk [vmem:[%s2651_s26 + $0x70] sm:$0xff] %vm915_vm5, %v1881_v20 }
 0x4af   : > { %v1848_v24 = vpop.f32.mrf.mxu3 }
 0x4b0   : > { %v1849_v61 = vadd.f32 %v3058_v21, %v1848_v24 }
 0x4b2   : > { %v1882_v46 = vadd.f32 %v1866_v22, %v1849_v61 }
 0x4b4   : > { %1898 = vst.msk [vmem:[%s2651_s26 + $0x78] sm:$0xff] %vm915_vm5, %v1882_v46 }
 0x4b5 PF: > { %s18_s9 = sadd.s32 1, %s2557_s9   ;;  %s3139_s27 = smov %s2549_s29 }
 0x4b6   : > { %p15_p8 = scmp.ge.s32.totalorder %s18_s9, 6   ;;  %s3140_s28 = smov %s2553_s30 }
 0x4b7   : > { %s3141_s29 = smov %s3144_s10  ;;  %s3142_s30 = smov %s3148_s11 }
 0x4b8   :  { %17 = sbr.rel (!%p15_p8) target bundleno = 3 (0x3), region = 89 }

</bundles_post_ra>
